<compile_context>
chip_gen: v7x
topology: tpu7x:2x2x1
jax: 0.10.0
libtpu: 0.0.40
codegen_flags: <defaults>
</compile_context>

<pallas_src>
import jax
import jax.numpy as jnp
from jax import lax
from jax.experimental import pallas as pl
from jax.experimental.pallas import tpu as pltpu


def _sigmoid(z):
    # tanh-based logistic: stays on the (otherwise idle) EUP slot.
    return 0.5 * (jnp.tanh(0.5 * z) + 1.0)


def _lstm_step(gx_t, h, c, whh_bf16):
    """One LSTM step. gx_t = relu(x_t) @ W_ih^T + b is precomputed (hoisted).

    Recurrent matmul runs in bf16 (single MXU pass) with f32 accumulation;
    cell state and gate math stay in f32.
    """
    H = h.shape[-1]
    rec = jnp.dot(h.astype(jnp.bfloat16), whh_bf16,
                  preferred_element_type=jnp.float32)          # (B, 4H) f32
    gates = gx_t + rec
    # Full-width nonlinearities (2 EUP pushes), slice afterwards.
    sig = _sigmoid(gates)
    tnh = jnp.tanh(gates)
    i_g = sig[:, 0:H]
    f_g = sig[:, H:2 * H]
    o_g = sig[:, 3 * H:4 * H]
    g_g = tnh[:, 2 * H:3 * H]
    c_new = f_g * c + i_g * g_g
    h_new = o_g * jnp.tanh(c_new)
    return h_new, c_new


# --------------------- fused encoder + decoder recurrence -------------------- #
def seq2seq_kernel(gxe_ref, gxd_ref, whh_ref, hall_ref, hc_ref):
    Te = gxe_ref.shape[0]
    Td = gxd_ref.shape[0]
    B = gxe_ref.shape[1]
    H = whh_ref.shape[1]

    e_whh = whh_ref[0].astype(jnp.bfloat16)     # (H, 4H), cast once per phase
    d_whh = whh_ref[1].astype(jnp.bfloat16)

    h0 = jnp.zeros((B, H), jnp.float32)
    c0 = jnp.zeros((B, H), jnp.float32)

    # ---- encoder recurrence (starts from zeros, as PyTorch LSTM does) ----
    def enc_body(t, carry):
        h, c = carry
        return _lstm_step(gxe_ref[t], h, c, e_whh)

    h, c = lax.fori_loop(0, Te, enc_body, (h0, c0), unroll=True)

    # ---- decoder recurrence, seeded with encoder final state ----
    # Only the serial chain lives here; the output projection is hoisted out
    # of the kernel entirely (one dense matmul on h_all in the wrapper).
    def dec_body(t, carry):
        h, c = carry
        h, c = _lstm_step(gxd_ref[t], h, c, d_whh)
        hall_ref[t] = h
        return h, c

    h, c = lax.fori_loop(0, Td, dec_body, (h, c), unroll=True)

    hc_ref[0] = h
    hc_ref[1] = c


# ------------------------------ Parameter init ------------------------------ #
def init_params(key, enc_vocab, dec_vocab, embed_size, hidden_size):
    ks = jax.random.split(key, 12)
    k = 1.0 / jnp.sqrt(hidden_size)

    def u(key, shape):
        return jax.random.uniform(key, shape, jnp.float32, -k, k)

    H, E = hidden_size, embed_size
    return {
        # embeddings (PyTorch default ~ N(0,1))
        "enc_emb": jax.random.normal(ks[0], (enc_vocab, E), jnp.float32),
        "dec_emb": jax.random.normal(ks[1], (dec_vocab, E), jnp.float32),
        # input projections, stored transposed + combined bias (b_ih + b_hh)
        "enc_wih_t": u(ks[2], (E, 4 * H)),
        "enc_b": (u(ks[4], (1, 4 * H)) + u(ks[5], (1, 4 * H))),
        "dec_wih_t": u(ks[6], (H, 4 * H)),
        "dec_b": (u(ks[8], (1, 4 * H)) + u(ks[9], (1, 4 * H))),
        # recurrent weights, pre-stacked [encoder, decoder]: ONE kernel input
        "whh_t": jnp.stack([u(ks[3], (H, 4 * H)), u(ks[7], (H, 4 * H))]),
        # final linear (hidden -> dec_vocab), stored transposed
        "lin_w_t": u(ks[10], (H, dec_vocab)),
        "lin_b": u(ks[11], (dec_vocab,)),
    }


# ------------------------------ Model forward ------------------------------- #
def model_forward(params, enc_inp, dec_inp):
    B = enc_inp.shape[0]
    E = params["enc_emb"].shape[1]
    H = params["whh_t"].shape[1]
    assert E == H, ("The reference model's decoder LSTM takes hidden_size "
                    "inputs, so embed_size must equal hidden_size.")

    # ---- embeddings + ReLU + hoisted input projections (one big matmul per
    #      layer, fused by XLA with the gather; kept out of the recurrence) ----
    # TODO(synk): embedding gather stays in XLA (jnp.take); a Pallas gather
    # kernel is not worthwhile at this size.
    emb_e = jnp.maximum(jnp.take(params["enc_emb"], enc_inp, axis=0), 0.0)  # (B,Te,E)
    emb_d = jnp.maximum(jnp.take(params["dec_emb"], dec_inp, axis=0), 0.0)  # (B,Td,E)
    gx_e = jnp.einsum("bte,ef->tbf", emb_e, params["enc_wih_t"]) + params["enc_b"]
    gx_d = jnp.einsum("bte,ef->tbf", emb_d, params["dec_wih_t"]) + params["dec_b"]
    Td = gx_d.shape[0]

    vmem = pl.BlockSpec(memory_space=pltpu.MemorySpace.VMEM)
    h_all, hc = pl.pallas_call(
        seq2seq_kernel,
        out_shape=(jax.ShapeDtypeStruct((Td, B, H), jnp.float32),   # decoder h_t
                   jax.ShapeDtypeStruct((2, B, H), jnp.float32)),   # (h_n, c_n)
        in_specs=[vmem, vmem, vmem],
        out_specs=(vmem, vmem),
    )(gx_e, gx_d, params["whh_t"])

    # Single dense output projection + bias, hoisted out of the recurrence.
    logits = jnp.einsum("tbh,hv->btv", h_all, params["lin_w_t"]) + params["lin_b"]

    # hs matches PyTorch LSTM: (h_n, c_n), each (num_layers=1, B, H)
    hs = (hc[0][None, :, :], hc[1][None, :, :])
    return logits, hs


if __name__ == "__main__":
    ENC_VOCAB, DEC_VOCAB = 50, 60
    EMBED, HIDDEN = 32, 32          # must be equal (see note above)
    B, T_ENC, T_DEC = 2, 8, 8

    key = jax.random.PRNGKey(0)
    k_p, k_e, k_d = jax.random.split(key, 3)
    params = init_params(k_p, ENC_VOCAB, DEC_VOCAB, EMBED, HIDDEN)

    enc_inp = jax.random.randint(k_e, (B, T_ENC), 0, ENC_VOCAB, dtype=jnp.int32)
    dec_inp = jax.random.randint(k_d, (B, T_DEC), 0, DEC_VOCAB, dtype=jnp.int32)

    logits, (h_n, c_n) = jax.jit(model_forward)(params, enc_inp, dec_inp)
    jax.block_until_ready((logits, h_n, c_n))

    assert logits.shape == (B, T_DEC, DEC_VOCAB)
    assert h_n.shape == (1, B, HIDDEN) and c_n.shape == (1, B, HIDDEN)
    print("KERNEL_OK")
</pallas_src>

<mosaic_0001>
module attributes {stable_mosaic.version = 11 : i64} {
  func.func @seq2seq_kernel(%arg0: memref<8x2x128xf32, #tpu.memory_space<vmem>>, %arg1: memref<8x2x128xf32, #tpu.memory_space<vmem>>, %arg2: memref<2x32x128xf32, #tpu.memory_space<vmem>>, %arg3: memref<8x2x32xf32, #tpu.memory_space<vmem>>, %arg4: memref<2x2x32xf32, #tpu.memory_space<vmem>>) attributes {dimension_semantics = [], scalar_prefetch = 0 : i64, scratch_operands = 0 : i64, tpu.core_type = #tpu.core_type<tc>} {
    %c0 = arith.constant 0 : index
    %c0_0 = arith.constant 0 : index
    %c0_1 = arith.constant 0 : index
    %0 = vector.load %arg2[%c0, %c0_0, %c0_1] : memref<2x32x128xf32, #tpu.memory_space<vmem>>, vector<1x32x128xf32>
    %1 = vector.shape_cast %0 : vector<1x32x128xf32> to vector<32x128xf32>
    %2 = arith.truncf %1 : vector<32x128xf32> to vector<32x128xbf16>
    %c1 = arith.constant 1 : index
    %c0_2 = arith.constant 0 : index
    %c0_3 = arith.constant 0 : index
    %3 = vector.load %arg2[%c1, %c0_2, %c0_3] : memref<2x32x128xf32, #tpu.memory_space<vmem>>, vector<1x32x128xf32>
    %4 = vector.shape_cast %3 : vector<1x32x128xf32> to vector<32x128xf32>
    %5 = arith.truncf %4 : vector<32x128xf32> to vector<32x128xbf16>
    %cst = arith.constant 0.000000e+00 : f32
    %6 = vector.broadcast %cst : f32 to vector<2x32xf32>
    %cst_4 = arith.constant 0.000000e+00 : f32
    %7 = vector.broadcast %cst_4 : f32 to vector<2x32xf32>
    %c0_i32 = arith.constant 0 : i32
    %8 = arith.index_cast %c0_i32 : i32 to index
    %c0_5 = arith.constant 0 : index
    %c0_6 = arith.constant 0 : index
    %9 = vector.load %arg0[%8, %c0_5, %c0_6] : memref<8x2x128xf32, #tpu.memory_space<vmem>>, vector<1x2x128xf32>
    %10 = vector.shape_cast %9 : vector<1x2x128xf32> to vector<2x128xf32>
    %11 = arith.truncf %6 : vector<2x32xf32> to vector<2x32xbf16>
    %cst_7 = arith.constant dense<0.000000e+00> : vector<2x128xf32>
    %12 = tpu.matmul %11, %2, %cst_7 {dimension_numbers = #tpu.dot_dimension_numbers<[1], [0], [0], [1], [0, 0, 1, 1], [], []>} : vector<2x32xbf16>, vector<32x128xbf16>, vector<2x128xf32> -> vector<2x128xf32>
    %13 = arith.addf %10, %12 : vector<2x128xf32>
    %cst_8 = arith.constant 5.000000e-01 : f32
    %14 = vector.broadcast %cst_8 : f32 to vector<2x128xf32>
    %15 = arith.mulf %14, %13 : vector<2x128xf32>
    %16 = math.tanh %15 : vector<2x128xf32>
    %cst_9 = arith.constant 1.000000e+00 : f32
    %17 = vector.broadcast %cst_9 : f32 to vector<2x128xf32>
    %18 = arith.addf %16, %17 : vector<2x128xf32>
    %cst_10 = arith.constant 5.000000e-01 : f32
    %19 = vector.broadcast %cst_10 : f32 to vector<2x128xf32>
    %20 = arith.mulf %19, %18 : vector<2x128xf32>
    %21 = math.tanh %13 : vector<2x128xf32>
    %22 = vector.extract_strided_slice %20 {offsets = [0, 0], sizes = [2, 32], strides = [1, 1]} : vector<2x128xf32> to vector<2x32xf32>
    %23 = vector.extract_strided_slice %20 {offsets = [0, 32], sizes = [2, 32], strides = [1, 1]} : vector<2x128xf32> to vector<2x32xf32>
    %24 = vector.extract_strided_slice %20 {offsets = [0, 96], sizes = [2, 32], strides = [1, 1]} : vector<2x128xf32> to vector<2x32xf32>
    %25 = vector.extract_strided_slice %21 {offsets = [0, 64], sizes = [2, 32], strides = [1, 1]} : vector<2x128xf32> to vector<2x32xf32>
    %26 = arith.mulf %23, %7 : vector<2x32xf32>
    %27 = arith.mulf %22, %25 : vector<2x32xf32>
    %28 = arith.addf %26, %27 : vector<2x32xf32>
    %29 = math.tanh %28 : vector<2x32xf32>
    %30 = arith.mulf %24, %29 : vector<2x32xf32>
    %c1_i32 = arith.constant 1 : i32
    %31 = arith.index_cast %c1_i32 : i32 to index
    %c0_11 = arith.constant 0 : index
    %c0_12 = arith.constant 0 : index
    %32 = vector.load %arg0[%31, %c0_11, %c0_12] : memref<8x2x128xf32, #tpu.memory_space<vmem>>, vector<1x2x128xf32>
    %33 = vector.shape_cast %32 : vector<1x2x128xf32> to vector<2x128xf32>
    %34 = arith.truncf %30 : vector<2x32xf32> to vector<2x32xbf16>
    %cst_13 = arith.constant dense<0.000000e+00> : vector<2x128xf32>
    %35 = tpu.matmul %34, %2, %cst_13 {dimension_numbers = #tpu.dot_dimension_numbers<[1], [0], [0], [1], [0, 0, 1, 1], [], []>} : vector<2x32xbf16>, vector<32x128xbf16>, vector<2x128xf32> -> vector<2x128xf32>
    %36 = arith.addf %33, %35 : vector<2x128xf32>
    %cst_14 = arith.constant 5.000000e-01 : f32
    %37 = vector.broadcast %cst_14 : f32 to vector<2x128xf32>
    %38 = arith.mulf %37, %36 : vector<2x128xf32>
    %39 = math.tanh %38 : vector<2x128xf32>
    %cst_15 = arith.constant 1.000000e+00 : f32
    %40 = vector.broadcast %cst_15 : f32 to vector<2x128xf32>
    %41 = arith.addf %39, %40 : vector<2x128xf32>
    %cst_16 = arith.constant 5.000000e-01 : f32
    %42 = vector.broadcast %cst_16 : f32 to vector<2x128xf32>
    %43 = arith.mulf %42, %41 : vector<2x128xf32>
    %44 = math.tanh %36 : vector<2x128xf32>
    %45 = vector.extract_strided_slice %43 {offsets = [0, 0], sizes = [2, 32], strides = [1, 1]} : vector<2x128xf32> to vector<2x32xf32>
    %46 = vector.extract_strided_slice %43 {offsets = [0, 32], sizes = [2, 32], strides = [1, 1]} : vector<2x128xf32> to vector<2x32xf32>
    %47 = vector.extract_strided_slice %43 {offsets = [0, 96], sizes = [2, 32], strides = [1, 1]} : vector<2x128xf32> to vector<2x32xf32>
    %48 = vector.extract_strided_slice %44 {offsets = [0, 64], sizes = [2, 32], strides = [1, 1]} : vector<2x128xf32> to vector<2x32xf32>
    %49 = arith.mulf %46, %28 : vector<2x32xf32>
    %50 = arith.mulf %45, %48 : vector<2x32xf32>
    %51 = arith.addf %49, %50 : vector<2x32xf32>
    %52 = math.tanh %51 : vector<2x32xf32>
    %53 = arith.mulf %47, %52 : vector<2x32xf32>
    %c2_i32 = arith.constant 2 : i32
    %54 = arith.index_cast %c2_i32 : i32 to index
    %c0_17 = arith.constant 0 : index
    %c0_18 = arith.constant 0 : index
    %55 = vector.load %arg0[%54, %c0_17, %c0_18] : memref<8x2x128xf32, #tpu.memory_space<vmem>>, vector<1x2x128xf32>
    %56 = vector.shape_cast %55 : vector<1x2x128xf32> to vector<2x128xf32>
    %57 = arith.truncf %53 : vector<2x32xf32> to vector<2x32xbf16>
    %cst_19 = arith.constant dense<0.000000e+00> : vector<2x128xf32>
    %58 = tpu.matmul %57, %2, %cst_19 {dimension_numbers = #tpu.dot_dimension_numbers<[1], [0], [0], [1], [0, 0, 1, 1], [], []>} : vector<2x32xbf16>, vector<32x128xbf16>, vector<2x128xf32> -> vector<2x128xf32>
    %59 = arith.addf %56, %58 : vector<2x128xf32>
    %cst_20 = arith.constant 5.000000e-01 : f32
    %60 = vector.broadcast %cst_20 : f32 to vector<2x128xf32>
    %61 = arith.mulf %60, %59 : vector<2x128xf32>
    %62 = math.tanh %61 : vector<2x128xf32>
    %cst_21 = arith.constant 1.000000e+00 : f32
    %63 = vector.broadcast %cst_21 : f32 to vector<2x128xf32>
    %64 = arith.addf %62, %63 : vector<2x128xf32>
    %cst_22 = arith.constant 5.000000e-01 : f32
    %65 = vector.broadcast %cst_22 : f32 to vector<2x128xf32>
    %66 = arith.mulf %65, %64 : vector<2x128xf32>
    %67 = math.tanh %59 : vector<2x128xf32>
    %68 = vector.extract_strided_slice %66 {offsets = [0, 0], sizes = [2, 32], strides = [1, 1]} : vector<2x128xf32> to vector<2x32xf32>
    %69 = vector.extract_strided_slice %66 {offsets = [0, 32], sizes = [2, 32], strides = [1, 1]} : vector<2x128xf32> to vector<2x32xf32>
    %70 = vector.extract_strided_slice %66 {offsets = [0, 96], sizes = [2, 32], strides = [1, 1]} : vector<2x128xf32> to vector<2x32xf32>
    %71 = vector.extract_strided_slice %67 {offsets = [0, 64], sizes = [2, 32], strides = [1, 1]} : vector<2x128xf32> to vector<2x32xf32>
    %72 = arith.mulf %69, %51 : vector<2x32xf32>
    %73 = arith.mulf %68, %71 : vector<2x32xf32>
    %74 = arith.addf %72, %73 : vector<2x32xf32>
    %75 = math.tanh %74 : vector<2x32xf32>
    %76 = arith.mulf %70, %75 : vector<2x32xf32>
    %c3_i32 = arith.constant 3 : i32
    %77 = arith.index_cast %c3_i32 : i32 to index
    %c0_23 = arith.constant 0 : index
    %c0_24 = arith.constant 0 : index
    %78 = vector.load %arg0[%77, %c0_23, %c0_24] : memref<8x2x128xf32, #tpu.memory_space<vmem>>, vector<1x2x128xf32>
    %79 = vector.shape_cast %78 : vector<1x2x128xf32> to vector<2x128xf32>
    %80 = arith.truncf %76 : vector<2x32xf32> to vector<2x32xbf16>
    %cst_25 = arith.constant dense<0.000000e+00> : vector<2x128xf32>
    %81 = tpu.matmul %80, %2, %cst_25 {dimension_numbers = #tpu.dot_dimension_numbers<[1], [0], [0], [1], [0, 0, 1, 1], [], []>} : vector<2x32xbf16>, vector<32x128xbf16>, vector<2x128xf32> -> vector<2x128xf32>
    %82 = arith.addf %79, %81 : vector<2x128xf32>
    %cst_26 = arith.constant 5.000000e-01 : f32
    %83 = vector.broadcast %cst_26 : f32 to vector<2x128xf32>
    %84 = arith.mulf %83, %82 : vector<2x128xf32>
    %85 = math.tanh %84 : vector<2x128xf32>
    %cst_27 = arith.constant 1.000000e+00 : f32
    %86 = vector.broadcast %cst_27 : f32 to vector<2x128xf32>
    %87 = arith.addf %85, %86 : vector<2x128xf32>
    %cst_28 = arith.constant 5.000000e-01 : f32
    %88 = vector.broadcast %cst_28 : f32 to vector<2x128xf32>
    %89 = arith.mulf %88, %87 : vector<2x128xf32>
    %90 = math.tanh %82 : vector<2x128xf32>
    %91 = vector.extract_strided_slice %89 {offsets = [0, 0], sizes = [2, 32], strides = [1, 1]} : vector<2x128xf32> to vector<2x32xf32>
    %92 = vector.extract_strided_slice %89 {offsets = [0, 32], sizes = [2, 32], strides = [1, 1]} : vector<2x128xf32> to vector<2x32xf32>
    %93 = vector.extract_strided_slice %89 {offsets = [0, 96], sizes = [2, 32], strides = [1, 1]} : vector<2x128xf32> to vector<2x32xf32>
    %94 = vector.extract_strided_slice %90 {offsets = [0, 64], sizes = [2, 32], strides = [1, 1]} : vector<2x128xf32> to vector<2x32xf32>
    %95 = arith.mulf %92, %74 : vector<2x32xf32>
    %96 = arith.mulf %91, %94 : vector<2x32xf32>
    %97 = arith.addf %95, %96 : vector<2x32xf32>
    %98 = math.tanh %97 : vector<2x32xf32>
    %99 = arith.mulf %93, %98 : vector<2x32xf32>
    %c4_i32 = arith.constant 4 : i32
    %100 = arith.index_cast %c4_i32 : i32 to index
    %c0_29 = arith.constant 0 : index
    %c0_30 = arith.constant 0 : index
    %101 = vector.load %arg0[%100, %c0_29, %c0_30] : memref<8x2x128xf32, #tpu.memory_space<vmem>>, vector<1x2x128xf32>
    %102 = vector.shape_cast %101 : vector<1x2x128xf32> to vector<2x128xf32>
    %103 = arith.truncf %99 : vector<2x32xf32> to vector<2x32xbf16>
    %cst_31 = arith.constant dense<0.000000e+00> : vector<2x128xf32>
    %104 = tpu.matmul %103, %2, %cst_31 {dimension_numbers = #tpu.dot_dimension_numbers<[1], [0], [0], [1], [0, 0, 1, 1], [], []>} : vector<2x32xbf16>, vector<32x128xbf16>, vector<2x128xf32> -> vector<2x128xf32>
    %105 = arith.addf %102, %104 : vector<2x128xf32>
    %cst_32 = arith.constant 5.000000e-01 : f32
    %106 = vector.broadcast %cst_32 : f32 to vector<2x128xf32>
    %107 = arith.mulf %106, %105 : vector<2x128xf32>
    %108 = math.tanh %107 : vector<2x128xf32>
    %cst_33 = arith.constant 1.000000e+00 : f32
    %109 = vector.broadcast %cst_33 : f32 to vector<2x128xf32>
    %110 = arith.addf %108, %109 : vector<2x128xf32>
    %cst_34 = arith.constant 5.000000e-01 : f32
    %111 = vector.broadcast %cst_34 : f32 to vector<2x128xf32>
    %112 = arith.mulf %111, %110 : vector<2x128xf32>
    %113 = math.tanh %105 : vector<2x128xf32>
    %114 = vector.extract_strided_slice %112 {offsets = [0, 0], sizes = [2, 32], strides = [1, 1]} : vector<2x128xf32> to vector<2x32xf32>
    %115 = vector.extract_strided_slice %112 {offsets = [0, 32], sizes = [2, 32], strides = [1, 1]} : vector<2x128xf32> to vector<2x32xf32>
    %116 = vector.extract_strided_slice %112 {offsets = [0, 96], sizes = [2, 32], strides = [1, 1]} : vector<2x128xf32> to vector<2x32xf32>
    %117 = vector.extract_strided_slice %113 {offsets = [0, 64], sizes = [2, 32], strides = [1, 1]} : vector<2x128xf32> to vector<2x32xf32>
    %118 = arith.mulf %115, %97 : vector<2x32xf32>
    %119 = arith.mulf %114, %117 : vector<2x32xf32>
    %120 = arith.addf %118, %119 : vector<2x32xf32>
    %121 = math.tanh %120 : vector<2x32xf32>
    %122 = arith.mulf %116, %121 : vector<2x32xf32>
    %c5_i32 = arith.constant 5 : i32
    %123 = arith.index_cast %c5_i32 : i32 to index
    %c0_35 = arith.constant 0 : index
    %c0_36 = arith.constant 0 : index
    %124 = vector.load %arg0[%123, %c0_35, %c0_36] : memref<8x2x128xf32, #tpu.memory_space<vmem>>, vector<1x2x128xf32>
    %125 = vector.shape_cast %124 : vector<1x2x128xf32> to vector<2x128xf32>
    %126 = arith.truncf %122 : vector<2x32xf32> to vector<2x32xbf16>
    %cst_37 = arith.constant dense<0.000000e+00> : vector<2x128xf32>
    %127 = tpu.matmul %126, %2, %cst_37 {dimension_numbers = #tpu.dot_dimension_numbers<[1], [0], [0], [1], [0, 0, 1, 1], [], []>} : vector<2x32xbf16>, vector<32x128xbf16>, vector<2x128xf32> -> vector<2x128xf32>
    %128 = arith.addf %125, %127 : vector<2x128xf32>
    %cst_38 = arith.constant 5.000000e-01 : f32
    %129 = vector.broadcast %cst_38 : f32 to vector<2x128xf32>
    %130 = arith.mulf %129, %128 : vector<2x128xf32>
    %131 = math.tanh %130 : vector<2x128xf32>
    %cst_39 = arith.constant 1.000000e+00 : f32
    %132 = vector.broadcast %cst_39 : f32 to vector<2x128xf32>
    %133 = arith.addf %131, %132 : vector<2x128xf32>
    %cst_40 = arith.constant 5.000000e-01 : f32
    %134 = vector.broadcast %cst_40 : f32 to vector<2x128xf32>
    %135 = arith.mulf %134, %133 : vector<2x128xf32>
    %136 = math.tanh %128 : vector<2x128xf32>
    %137 = vector.extract_strided_slice %135 {offsets = [0, 0], sizes = [2, 32], strides = [1, 1]} : vector<2x128xf32> to vector<2x32xf32>
    %138 = vector.extract_strided_slice %135 {offsets = [0, 32], sizes = [2, 32], strides = [1, 1]} : vector<2x128xf32> to vector<2x32xf32>
    %139 = vector.extract_strided_slice %135 {offsets = [0, 96], sizes = [2, 32], strides = [1, 1]} : vector<2x128xf32> to vector<2x32xf32>
    %140 = vector.extract_strided_slice %136 {offsets = [0, 64], sizes = [2, 32], strides = [1, 1]} : vector<2x128xf32> to vector<2x32xf32>
    %141 = arith.mulf %138, %120 : vector<2x32xf32>
    %142 = arith.mulf %137, %140 : vector<2x32xf32>
    %143 = arith.addf %141, %142 : vector<2x32xf32>
    %144 = math.tanh %143 : vector<2x32xf32>
    %145 = arith.mulf %139, %144 : vector<2x32xf32>
    %c6_i32 = arith.constant 6 : i32
    %146 = arith.index_cast %c6_i32 : i32 to index
    %c0_41 = arith.constant 0 : index
    %c0_42 = arith.constant 0 : index
    %147 = vector.load %arg0[%146, %c0_41, %c0_42] : memref<8x2x128xf32, #tpu.memory_space<vmem>>, vector<1x2x128xf32>
    %148 = vector.shape_cast %147 : vector<1x2x128xf32> to vector<2x128xf32>
    %149 = arith.truncf %145 : vector<2x32xf32> to vector<2x32xbf16>
    %cst_43 = arith.constant dense<0.000000e+00> : vector<2x128xf32>
    %150 = tpu.matmul %149, %2, %cst_43 {dimension_numbers = #tpu.dot_dimension_numbers<[1], [0], [0], [1], [0, 0, 1, 1], [], []>} : vector<2x32xbf16>, vector<32x128xbf16>, vector<2x128xf32> -> vector<2x128xf32>
    %151 = arith.addf %148, %150 : vector<2x128xf32>
    %cst_44 = arith.constant 5.000000e-01 : f32
    %152 = vector.broadcast %cst_44 : f32 to vector<2x128xf32>
    %153 = arith.mulf %152, %151 : vector<2x128xf32>
    %154 = math.tanh %153 : vector<2x128xf32>
    %cst_45 = arith.constant 1.000000e+00 : f32
    %155 = vector.broadcast %cst_45 : f32 to vector<2x128xf32>
    %156 = arith.addf %154, %155 : vector<2x128xf32>
    %cst_46 = arith.constant 5.000000e-01 : f32
    %157 = vector.broadcast %cst_46 : f32 to vector<2x128xf32>
    %158 = arith.mulf %157, %156 : vector<2x128xf32>
    %159 = math.tanh %151 : vector<2x128xf32>
    %160 = vector.extract_strided_slice %158 {offsets = [0, 0], sizes = [2, 32], strides = [1, 1]} : vector<2x128xf32> to vector<2x32xf32>
    %161 = vector.extract_strided_slice %158 {offsets = [0, 32], sizes = [2, 32], strides = [1, 1]} : vector<2x128xf32> to vector<2x32xf32>
    %162 = vector.extract_strided_slice %158 {offsets = [0, 96], sizes = [2, 32], strides = [1, 1]} : vector<2x128xf32> to vector<2x32xf32>
    %163 = vector.extract_strided_slice %159 {offsets = [0, 64], sizes = [2, 32], strides = [1, 1]} : vector<2x128xf32> to vector<2x32xf32>
    %164 = arith.mulf %161, %143 : vector<2x32xf32>
    %165 = arith.mulf %160, %163 : vector<2x32xf32>
    %166 = arith.addf %164, %165 : vector<2x32xf32>
    %167 = math.tanh %166 : vector<2x32xf32>
    %168 = arith.mulf %162, %167 : vector<2x32xf32>
    %c7_i32 = arith.constant 7 : i32
    %169 = arith.index_cast %c7_i32 : i32 to index
    %c0_47 = arith.constant 0 : index
    %c0_48 = arith.constant 0 : index
    %170 = vector.load %arg0[%169, %c0_47, %c0_48] : memref<8x2x128xf32, #tpu.memory_space<vmem>>, vector<1x2x128xf32>
    %171 = vector.shape_cast %170 : vector<1x2x128xf32> to vector<2x128xf32>
    %172 = arith.truncf %168 : vector<2x32xf32> to vector<2x32xbf16>
    %cst_49 = arith.constant dense<0.000000e+00> : vector<2x128xf32>
    %173 = tpu.matmul %172, %2, %cst_49 {dimension_numbers = #tpu.dot_dimension_numbers<[1], [0], [0], [1], [0, 0, 1, 1], [], []>} : vector<2x32xbf16>, vector<32x128xbf16>, vector<2x128xf32> -> vector<2x128xf32>
    %174 = arith.addf %171, %173 : vector<2x128xf32>
    %cst_50 = arith.constant 5.000000e-01 : f32
    %175 = vector.broadcast %cst_50 : f32 to vector<2x128xf32>
    %176 = arith.mulf %175, %174 : vector<2x128xf32>
    %177 = math.tanh %176 : vector<2x128xf32>
    %cst_51 = arith.constant 1.000000e+00 : f32
    %178 = vector.broadcast %cst_51 : f32 to vector<2x128xf32>
    %179 = arith.addf %177, %178 : vector<2x128xf32>
    %cst_52 = arith.constant 5.000000e-01 : f32
    %180 = vector.broadcast %cst_52 : f32 to vector<2x128xf32>
    %181 = arith.mulf %180, %179 : vector<2x128xf32>
    %182 = math.tanh %174 : vector<2x128xf32>
    %183 = vector.extract_strided_slice %181 {offsets = [0, 0], sizes = [2, 32], strides = [1, 1]} : vector<2x128xf32> to vector<2x32xf32>
    %184 = vector.extract_strided_slice %181 {offsets = [0, 32], sizes = [2, 32], strides = [1, 1]} : vector<2x128xf32> to vector<2x32xf32>
    %185 = vector.extract_strided_slice %181 {offsets = [0, 96], sizes = [2, 32], strides = [1, 1]} : vector<2x128xf32> to vector<2x32xf32>
    %186 = vector.extract_strided_slice %182 {offsets = [0, 64], sizes = [2, 32], strides = [1, 1]} : vector<2x128xf32> to vector<2x32xf32>
    %187 = arith.mulf %184, %166 : vector<2x32xf32>
    %188 = arith.mulf %183, %186 : vector<2x32xf32>
    %189 = arith.addf %187, %188 : vector<2x32xf32>
    %190 = math.tanh %189 : vector<2x32xf32>
    %191 = arith.mulf %185, %190 : vector<2x32xf32>
    %c8_i32 = arith.constant 8 : i32
    %c0_i32_53 = arith.constant 0 : i32
    %192 = arith.index_cast %c0_i32_53 : i32 to index
    %c0_54 = arith.constant 0 : index
    %c0_55 = arith.constant 0 : index
    %193 = vector.load %arg1[%192, %c0_54, %c0_55] : memref<8x2x128xf32, #tpu.memory_space<vmem>>, vector<1x2x128xf32>
    %194 = vector.shape_cast %193 : vector<1x2x128xf32> to vector<2x128xf32>
    %195 = arith.truncf %191 : vector<2x32xf32> to vector<2x32xbf16>
    %cst_56 = arith.constant dense<0.000000e+00> : vector<2x128xf32>
    %196 = tpu.matmul %195, %5, %cst_56 {dimension_numbers = #tpu.dot_dimension_numbers<[1], [0], [0], [1], [0, 0, 1, 1], [], []>} : vector<2x32xbf16>, vector<32x128xbf16>, vector<2x128xf32> -> vector<2x128xf32>
    %197 = arith.addf %194, %196 : vector<2x128xf32>
    %cst_57 = arith.constant 5.000000e-01 : f32
    %198 = vector.broadcast %cst_57 : f32 to vector<2x128xf32>
    %199 = arith.mulf %198, %197 : vector<2x128xf32>
    %200 = math.tanh %199 : vector<2x128xf32>
    %cst_58 = arith.constant 1.000000e+00 : f32
    %201 = vector.broadcast %cst_58 : f32 to vector<2x128xf32>
    %202 = arith.addf %200, %201 : vector<2x128xf32>
    %cst_59 = arith.constant 5.000000e-01 : f32
    %203 = vector.broadcast %cst_59 : f32 to vector<2x128xf32>
    %204 = arith.mulf %203, %202 : vector<2x128xf32>
    %205 = math.tanh %197 : vector<2x128xf32>
    %206 = vector.extract_strided_slice %204 {offsets = [0, 0], sizes = [2, 32], strides = [1, 1]} : vector<2x128xf32> to vector<2x32xf32>
    %207 = vector.extract_strided_slice %204 {offsets = [0, 32], sizes = [2, 32], strides = [1, 1]} : vector<2x128xf32> to vector<2x32xf32>
    %208 = vector.extract_strided_slice %204 {offsets = [0, 96], sizes = [2, 32], strides = [1, 1]} : vector<2x128xf32> to vector<2x32xf32>
    %209 = vector.extract_strided_slice %205 {offsets = [0, 64], sizes = [2, 32], strides = [1, 1]} : vector<2x128xf32> to vector<2x32xf32>
    %210 = arith.mulf %207, %189 : vector<2x32xf32>
    %211 = arith.mulf %206, %209 : vector<2x32xf32>
    %212 = arith.addf %210, %211 : vector<2x32xf32>
    %213 = math.tanh %212 : vector<2x32xf32>
    %214 = arith.mulf %208, %213 : vector<2x32xf32>
    %215 = arith.index_cast %c0_i32_53 : i32 to index
    %c0_60 = arith.constant 0 : index
    %c0_61 = arith.constant 0 : index
    %216 = vector.load %arg3[%215, %c0_60, %c0_61] : memref<8x2x32xf32, #tpu.memory_space<vmem>>, vector<1x2x32xf32>
    %217 = vector.shape_cast %216 : vector<1x2x32xf32> to vector<2x32xf32>
    %218 = vector.shape_cast %214 : vector<2x32xf32> to vector<1x2x32xf32>
    tpu.vector_store %arg3[%215, %c0_60, %c0_61], %218 {strides = array<i32>} : memref<8x2x32xf32, #tpu.memory_space<vmem>>, vector<1x2x32xf32>,
    %c1_i32_62 = arith.constant 1 : i32
    %219 = arith.index_cast %c1_i32_62 : i32 to index
    %c0_63 = arith.constant 0 : index
    %c0_64 = arith.constant 0 : index
    %220 = vector.load %arg1[%219, %c0_63, %c0_64] : memref<8x2x128xf32, #tpu.memory_space<vmem>>, vector<1x2x128xf32>
    %221 = vector.shape_cast %220 : vector<1x2x128xf32> to vector<2x128xf32>
    %222 = arith.truncf %214 : vector<2x32xf32> to vector<2x32xbf16>
    %cst_65 = arith.constant dense<0.000000e+00> : vector<2x128xf32>
    %223 = tpu.matmul %222, %5, %cst_65 {dimension_numbers = #tpu.dot_dimension_numbers<[1], [0], [0], [1], [0, 0, 1, 1], [], []>} : vector<2x32xbf16>, vector<32x128xbf16>, vector<2x128xf32> -> vector<2x128xf32>
    %224 = arith.addf %221, %223 : vector<2x128xf32>
    %cst_66 = arith.constant 5.000000e-01 : f32
    %225 = vector.broadcast %cst_66 : f32 to vector<2x128xf32>
    %226 = arith.mulf %225, %224 : vector<2x128xf32>
    %227 = math.tanh %226 : vector<2x128xf32>
    %cst_67 = arith.constant 1.000000e+00 : f32
    %228 = vector.broadcast %cst_67 : f32 to vector<2x128xf32>
    %229 = arith.addf %227, %228 : vector<2x128xf32>
    %cst_68 = arith.constant 5.000000e-01 : f32
    %230 = vector.broadcast %cst_68 : f32 to vector<2x128xf32>
    %231 = arith.mulf %230, %229 : vector<2x128xf32>
    %232 = math.tanh %224 : vector<2x128xf32>
    %233 = vector.extract_strided_slice %231 {offsets = [0, 0], sizes = [2, 32], strides = [1, 1]} : vector<2x128xf32> to vector<2x32xf32>
    %234 = vector.extract_strided_slice %231 {offsets = [0, 32], sizes = [2, 32], strides = [1, 1]} : vector<2x128xf32> to vector<2x32xf32>
    %235 = vector.extract_strided_slice %231 {offsets = [0, 96], sizes = [2, 32], strides = [1, 1]} : vector<2x128xf32> to vector<2x32xf32>
    %236 = vector.extract_strided_slice %232 {offsets = [0, 64], sizes = [2, 32], strides = [1, 1]} : vector<2x128xf32> to vector<2x32xf32>
    %237 = arith.mulf %234, %212 : vector<2x32xf32>
    %238 = arith.mulf %233, %236 : vector<2x32xf32>
    %239 = arith.addf %237, %238 : vector<2x32xf32>
    %240 = math.tanh %239 : vector<2x32xf32>
    %241 = arith.mulf %235, %240 : vector<2x32xf32>
    %242 = arith.index_cast %c1_i32_62 : i32 to index
    %c0_69 = arith.constant 0 : index
    %c0_70 = arith.constant 0 : index
    %243 = vector.load %arg3[%242, %c0_69, %c0_70] : memref<8x2x32xf32, #tpu.memory_space<vmem>>, vector<1x2x32xf32>
    %244 = vector.shape_cast %243 : vector<1x2x32xf32> to vector<2x32xf32>
    %245 = vector.shape_cast %241 : vector<2x32xf32> to vector<1x2x32xf32>
    tpu.vector_store %arg3[%242, %c0_69, %c0_70], %245 {strides = array<i32>} : memref<8x2x32xf32, #tpu.memory_space<vmem>>, vector<1x2x32xf32>,
    %c2_i32_71 = arith.constant 2 : i32
    %246 = arith.index_cast %c2_i32_71 : i32 to index
    %c0_72 = arith.constant 0 : index
    %c0_73 = arith.constant 0 : index
    %247 = vector.load %arg1[%246, %c0_72, %c0_73] : memref<8x2x128xf32, #tpu.memory_space<vmem>>, vector<1x2x128xf32>
    %248 = vector.shape_cast %247 : vector<1x2x128xf32> to vector<2x128xf32>
    %249 = arith.truncf %241 : vector<2x32xf32> to vector<2x32xbf16>
    %cst_74 = arith.constant dense<0.000000e+00> : vector<2x128xf32>
    %250 = tpu.matmul %249, %5, %cst_74 {dimension_numbers = #tpu.dot_dimension_numbers<[1], [0], [0], [1], [0, 0, 1, 1], [], []>} : vector<2x32xbf16>, vector<32x128xbf16>, vector<2x128xf32> -> vector<2x128xf32>
    %251 = arith.addf %248, %250 : vector<2x128xf32>
    %cst_75 = arith.constant 5.000000e-01 : f32
    %252 = vector.broadcast %cst_75 : f32 to vector<2x128xf32>
    %253 = arith.mulf %252, %251 : vector<2x128xf32>
    %254 = math.tanh %253 : vector<2x128xf32>
    %cst_76 = arith.constant 1.000000e+00 : f32
    %255 = vector.broadcast %cst_76 : f32 to vector<2x128xf32>
    %256 = arith.addf %254, %255 : vector<2x128xf32>
    %cst_77 = arith.constant 5.000000e-01 : f32
    %257 = vector.broadcast %cst_77 : f32 to vector<2x128xf32>
    %258 = arith.mulf %257, %256 : vector<2x128xf32>
    %259 = math.tanh %251 : vector<2x128xf32>
    %260 = vector.extract_strided_slice %258 {offsets = [0, 0], sizes = [2, 32], strides = [1, 1]} : vector<2x128xf32> to vector<2x32xf32>
    %261 = vector.extract_strided_slice %258 {offsets = [0, 32], sizes = [2, 32], strides = [1, 1]} : vector<2x128xf32> to vector<2x32xf32>
    %262 = vector.extract_strided_slice %258 {offsets = [0, 96], sizes = [2, 32], strides = [1, 1]} : vector<2x128xf32> to vector<2x32xf32>
    %263 = vector.extract_strided_slice %259 {offsets = [0, 64], sizes = [2, 32], strides = [1, 1]} : vector<2x128xf32> to vector<2x32xf32>
    %264 = arith.mulf %261, %239 : vector<2x32xf32>
    %265 = arith.mulf %260, %263 : vector<2x32xf32>
    %266 = arith.addf %264, %265 : vector<2x32xf32>
    %267 = math.tanh %266 : vector<2x32xf32>
    %268 = arith.mulf %262, %267 : vector<2x32xf32>
    %269 = arith.index_cast %c2_i32_71 : i32 to index
    %c0_78 = arith.constant 0 : index
    %c0_79 = arith.constant 0 : index
    %270 = vector.load %arg3[%269, %c0_78, %c0_79] : memref<8x2x32xf32, #tpu.memory_space<vmem>>, vector<1x2x32xf32>
    %271 = vector.shape_cast %270 : vector<1x2x32xf32> to vector<2x32xf32>
    %272 = vector.shape_cast %268 : vector<2x32xf32> to vector<1x2x32xf32>
    tpu.vector_store %arg3[%269, %c0_78, %c0_79], %272 {strides = array<i32>} : memref<8x2x32xf32, #tpu.memory_space<vmem>>, vector<1x2x32xf32>,
    %c3_i32_80 = arith.constant 3 : i32
    %273 = arith.index_cast %c3_i32_80 : i32 to index
    %c0_81 = arith.constant 0 : index
    %c0_82 = arith.constant 0 : index
    %274 = vector.load %arg1[%273, %c0_81, %c0_82] : memref<8x2x128xf32, #tpu.memory_space<vmem>>, vector<1x2x128xf32>
    %275 = vector.shape_cast %274 : vector<1x2x128xf32> to vector<2x128xf32>
    %276 = arith.truncf %268 : vector<2x32xf32> to vector<2x32xbf16>
    %cst_83 = arith.constant dense<0.000000e+00> : vector<2x128xf32>
    %277 = tpu.matmul %276, %5, %cst_83 {dimension_numbers = #tpu.dot_dimension_numbers<[1], [0], [0], [1], [0, 0, 1, 1], [], []>} : vector<2x32xbf16>, vector<32x128xbf16>, vector<2x128xf32> -> vector<2x128xf32>
    %278 = arith.addf %275, %277 : vector<2x128xf32>
    %cst_84 = arith.constant 5.000000e-01 : f32
    %279 = vector.broadcast %cst_84 : f32 to vector<2x128xf32>
    %280 = arith.mulf %279, %278 : vector<2x128xf32>
    %281 = math.tanh %280 : vector<2x128xf32>
    %cst_85 = arith.constant 1.000000e+00 : f32
    %282 = vector.broadcast %cst_85 : f32 to vector<2x128xf32>
    %283 = arith.addf %281, %282 : vector<2x128xf32>
    %cst_86 = arith.constant 5.000000e-01 : f32
    %284 = vector.broadcast %cst_86 : f32 to vector<2x128xf32>
    %285 = arith.mulf %284, %283 : vector<2x128xf32>
    %286 = math.tanh %278 : vector<2x128xf32>
    %287 = vector.extract_strided_slice %285 {offsets = [0, 0], sizes = [2, 32], strides = [1, 1]} : vector<2x128xf32> to vector<2x32xf32>
    %288 = vector.extract_strided_slice %285 {offsets = [0, 32], sizes = [2, 32], strides = [1, 1]} : vector<2x128xf32> to vector<2x32xf32>
    %289 = vector.extract_strided_slice %285 {offsets = [0, 96], sizes = [2, 32], strides = [1, 1]} : vector<2x128xf32> to vector<2x32xf32>
    %290 = vector.extract_strided_slice %286 {offsets = [0, 64], sizes = [2, 32], strides = [1, 1]} : vector<2x128xf32> to vector<2x32xf32>
    %291 = arith.mulf %288, %266 : vector<2x32xf32>
    %292 = arith.mulf %287, %290 : vector<2x32xf32>
    %293 = arith.addf %291, %292 : vector<2x32xf32>
    %294 = math.tanh %293 : vector<2x32xf32>
    %295 = arith.mulf %289, %294 : vector<2x32xf32>
    %296 = arith.index_cast %c3_i32_80 : i32 to index
    %c0_87 = arith.constant 0 : index
    %c0_88 = arith.constant 0 : index
    %297 = vector.load %arg3[%296, %c0_87, %c0_88] : memref<8x2x32xf32, #tpu.memory_space<vmem>>, vector<1x2x32xf32>
    %298 = vector.shape_cast %297 : vector<1x2x32xf32> to vector<2x32xf32>
    %299 = vector.shape_cast %295 : vector<2x32xf32> to vector<1x2x32xf32>
    tpu.vector_store %arg3[%296, %c0_87, %c0_88], %299 {strides = array<i32>} : memref<8x2x32xf32, #tpu.memory_space<vmem>>, vector<1x2x32xf32>,
    %c4_i32_89 = arith.constant 4 : i32
    %300 = arith.index_cast %c4_i32_89 : i32 to index
    %c0_90 = arith.constant 0 : index
    %c0_91 = arith.constant 0 : index
    %301 = vector.load %arg1[%300, %c0_90, %c0_91] : memref<8x2x128xf32, #tpu.memory_space<vmem>>, vector<1x2x128xf32>
    %302 = vector.shape_cast %301 : vector<1x2x128xf32> to vector<2x128xf32>
    %303 = arith.truncf %295 : vector<2x32xf32> to vector<2x32xbf16>
    %cst_92 = arith.constant dense<0.000000e+00> : vector<2x128xf32>
    %304 = tpu.matmul %303, %5, %cst_92 {dimension_numbers = #tpu.dot_dimension_numbers<[1], [0], [0], [1], [0, 0, 1, 1], [], []>} : vector<2x32xbf16>, vector<32x128xbf16>, vector<2x128xf32> -> vector<2x128xf32>
    %305 = arith.addf %302, %304 : vector<2x128xf32>
    %cst_93 = arith.constant 5.000000e-01 : f32
    %306 = vector.broadcast %cst_93 : f32 to vector<2x128xf32>
    %307 = arith.mulf %306, %305 : vector<2x128xf32>
    %308 = math.tanh %307 : vector<2x128xf32>
    %cst_94 = arith.constant 1.000000e+00 : f32
    %309 = vector.broadcast %cst_94 : f32 to vector<2x128xf32>
    %310 = arith.addf %308, %309 : vector<2x128xf32>
    %cst_95 = arith.constant 5.000000e-01 : f32
    %311 = vector.broadcast %cst_95 : f32 to vector<2x128xf32>
    %312 = arith.mulf %311, %310 : vector<2x128xf32>
    %313 = math.tanh %305 : vector<2x128xf32>
    %314 = vector.extract_strided_slice %312 {offsets = [0, 0], sizes = [2, 32], strides = [1, 1]} : vector<2x128xf32> to vector<2x32xf32>
    %315 = vector.extract_strided_slice %312 {offsets = [0, 32], sizes = [2, 32], strides = [1, 1]} : vector<2x128xf32> to vector<2x32xf32>
    %316 = vector.extract_strided_slice %312 {offsets = [0, 96], sizes = [2, 32], strides = [1, 1]} : vector<2x128xf32> to vector<2x32xf32>
    %317 = vector.extract_strided_slice %313 {offsets = [0, 64], sizes = [2, 32], strides = [1, 1]} : vector<2x128xf32> to vector<2x32xf32>
    %318 = arith.mulf %315, %293 : vector<2x32xf32>
    %319 = arith.mulf %314, %317 : vector<2x32xf32>
    %320 = arith.addf %318, %319 : vector<2x32xf32>
    %321 = math.tanh %320 : vector<2x32xf32>
    %322 = arith.mulf %316, %321 : vector<2x32xf32>
    %323 = arith.index_cast %c4_i32_89 : i32 to index
    %c0_96 = arith.constant 0 : index
    %c0_97 = arith.constant 0 : index
    %324 = vector.load %arg3[%323, %c0_96, %c0_97] : memref<8x2x32xf32, #tpu.memory_space<vmem>>, vector<1x2x32xf32>
    %325 = vector.shape_cast %324 : vector<1x2x32xf32> to vector<2x32xf32>
    %326 = vector.shape_cast %322 : vector<2x32xf32> to vector<1x2x32xf32>
    tpu.vector_store %arg3[%323, %c0_96, %c0_97], %326 {strides = array<i32>} : memref<8x2x32xf32, #tpu.memory_space<vmem>>, vector<1x2x32xf32>,
    %c5_i32_98 = arith.constant 5 : i32
    %327 = arith.index_cast %c5_i32_98 : i32 to index
    %c0_99 = arith.constant 0 : index
    %c0_100 = arith.constant 0 : index
    %328 = vector.load %arg1[%327, %c0_99, %c0_100] : memref<8x2x128xf32, #tpu.memory_space<vmem>>, vector<1x2x128xf32>
    %329 = vector.shape_cast %328 : vector<1x2x128xf32> to vector<2x128xf32>
    %330 = arith.truncf %322 : vector<2x32xf32> to vector<2x32xbf16>
    %cst_101 = arith.constant dense<0.000000e+00> : vector<2x128xf32>
    %331 = tpu.matmul %330, %5, %cst_101 {dimension_numbers = #tpu.dot_dimension_numbers<[1], [0], [0], [1], [0, 0, 1, 1], [], []>} : vector<2x32xbf16>, vector<32x128xbf16>, vector<2x128xf32> -> vector<2x128xf32>
    %332 = arith.addf %329, %331 : vector<2x128xf32>
    %cst_102 = arith.constant 5.000000e-01 : f32
    %333 = vector.broadcast %cst_102 : f32 to vector<2x128xf32>
    %334 = arith.mulf %333, %332 : vector<2x128xf32>
    %335 = math.tanh %334 : vector<2x128xf32>
    %cst_103 = arith.constant 1.000000e+00 : f32
    %336 = vector.broadcast %cst_103 : f32 to vector<2x128xf32>
    %337 = arith.addf %335, %336 : vector<2x128xf32>
    %cst_104 = arith.constant 5.000000e-01 : f32
    %338 = vector.broadcast %cst_104 : f32 to vector<2x128xf32>
    %339 = arith.mulf %338, %337 : vector<2x128xf32>
    %340 = math.tanh %332 : vector<2x128xf32>
    %341 = vector.extract_strided_slice %339 {offsets = [0, 0], sizes = [2, 32], strides = [1, 1]} : vector<2x128xf32> to vector<2x32xf32>
    %342 = vector.extract_strided_slice %339 {offsets = [0, 32], sizes = [2, 32], strides = [1, 1]} : vector<2x128xf32> to vector<2x32xf32>
    %343 = vector.extract_strided_slice %339 {offsets = [0, 96], sizes = [2, 32], strides = [1, 1]} : vector<2x128xf32> to vector<2x32xf32>
    %344 = vector.extract_strided_slice %340 {offsets = [0, 64], sizes = [2, 32], strides = [1, 1]} : vector<2x128xf32> to vector<2x32xf32>
    %345 = arith.mulf %342, %320 : vector<2x32xf32>
    %346 = arith.mulf %341, %344 : vector<2x32xf32>
    %347 = arith.addf %345, %346 : vector<2x32xf32>
    %348 = math.tanh %347 : vector<2x32xf32>
    %349 = arith.mulf %343, %348 : vector<2x32xf32>
    %350 = arith.index_cast %c5_i32_98 : i32 to index
    %c0_105 = arith.constant 0 : index
    %c0_106 = arith.constant 0 : index
    %351 = vector.load %arg3[%350, %c0_105, %c0_106] : memref<8x2x32xf32, #tpu.memory_space<vmem>>, vector<1x2x32xf32>
    %352 = vector.shape_cast %351 : vector<1x2x32xf32> to vector<2x32xf32>
    %353 = vector.shape_cast %349 : vector<2x32xf32> to vector<1x2x32xf32>
    tpu.vector_store %arg3[%350, %c0_105, %c0_106], %353 {strides = array<i32>} : memref<8x2x32xf32, #tpu.memory_space<vmem>>, vector<1x2x32xf32>,
    %c6_i32_107 = arith.constant 6 : i32
    %354 = arith.index_cast %c6_i32_107 : i32 to index
    %c0_108 = arith.constant 0 : index
    %c0_109 = arith.constant 0 : index
    %355 = vector.load %arg1[%354, %c0_108, %c0_109] : memref<8x2x128xf32, #tpu.memory_space<vmem>>, vector<1x2x128xf32>
    %356 = vector.shape_cast %355 : vector<1x2x128xf32> to vector<2x128xf32>
    %357 = arith.truncf %349 : vector<2x32xf32> to vector<2x32xbf16>
    %cst_110 = arith.constant dense<0.000000e+00> : vector<2x128xf32>
    %358 = tpu.matmul %357, %5, %cst_110 {dimension_numbers = #tpu.dot_dimension_numbers<[1], [0], [0], [1], [0, 0, 1, 1], [], []>} : vector<2x32xbf16>, vector<32x128xbf16>, vector<2x128xf32> -> vector<2x128xf32>
    %359 = arith.addf %356, %358 : vector<2x128xf32>
    %cst_111 = arith.constant 5.000000e-01 : f32
    %360 = vector.broadcast %cst_111 : f32 to vector<2x128xf32>
    %361 = arith.mulf %360, %359 : vector<2x128xf32>
    %362 = math.tanh %361 : vector<2x128xf32>
    %cst_112 = arith.constant 1.000000e+00 : f32
    %363 = vector.broadcast %cst_112 : f32 to vector<2x128xf32>
    %364 = arith.addf %362, %363 : vector<2x128xf32>
    %cst_113 = arith.constant 5.000000e-01 : f32
    %365 = vector.broadcast %cst_113 : f32 to vector<2x128xf32>
    %366 = arith.mulf %365, %364 : vector<2x128xf32>
    %367 = math.tanh %359 : vector<2x128xf32>
    %368 = vector.extract_strided_slice %366 {offsets = [0, 0], sizes = [2, 32], strides = [1, 1]} : vector<2x128xf32> to vector<2x32xf32>
    %369 = vector.extract_strided_slice %366 {offsets = [0, 32], sizes = [2, 32], strides = [1, 1]} : vector<2x128xf32> to vector<2x32xf32>
    %370 = vector.extract_strided_slice %366 {offsets = [0, 96], sizes = [2, 32], strides = [1, 1]} : vector<2x128xf32> to vector<2x32xf32>
    %371 = vector.extract_strided_slice %367 {offsets = [0, 64], sizes = [2, 32], strides = [1, 1]} : vector<2x128xf32> to vector<2x32xf32>
    %372 = arith.mulf %369, %347 : vector<2x32xf32>
    %373 = arith.mulf %368, %371 : vector<2x32xf32>
    %374 = arith.addf %372, %373 : vector<2x32xf32>
    %375 = math.tanh %374 : vector<2x32xf32>
    %376 = arith.mulf %370, %375 : vector<2x32xf32>
    %377 = arith.index_cast %c6_i32_107 : i32 to index
    %c0_114 = arith.constant 0 : index
    %c0_115 = arith.constant 0 : index
    %378 = vector.load %arg3[%377, %c0_114, %c0_115] : memref<8x2x32xf32, #tpu.memory_space<vmem>>, vector<1x2x32xf32>
    %379 = vector.shape_cast %378 : vector<1x2x32xf32> to vector<2x32xf32>
    %380 = vector.shape_cast %376 : vector<2x32xf32> to vector<1x2x32xf32>
    tpu.vector_store %arg3[%377, %c0_114, %c0_115], %380 {strides = array<i32>} : memref<8x2x32xf32, #tpu.memory_space<vmem>>, vector<1x2x32xf32>,
    %c7_i32_116 = arith.constant 7 : i32
    %381 = arith.index_cast %c7_i32_116 : i32 to index
    %c0_117 = arith.constant 0 : index
    %c0_118 = arith.constant 0 : index
    %382 = vector.load %arg1[%381, %c0_117, %c0_118] : memref<8x2x128xf32, #tpu.memory_space<vmem>>, vector<1x2x128xf32>
    %383 = vector.shape_cast %382 : vector<1x2x128xf32> to vector<2x128xf32>
    %384 = arith.truncf %376 : vector<2x32xf32> to vector<2x32xbf16>
    %cst_119 = arith.constant dense<0.000000e+00> : vector<2x128xf32>
    %385 = tpu.matmul %384, %5, %cst_119 {dimension_numbers = #tpu.dot_dimension_numbers<[1], [0], [0], [1], [0, 0, 1, 1], [], []>} : vector<2x32xbf16>, vector<32x128xbf16>, vector<2x128xf32> -> vector<2x128xf32>
    %386 = arith.addf %383, %385 : vector<2x128xf32>
    %cst_120 = arith.constant 5.000000e-01 : f32
    %387 = vector.broadcast %cst_120 : f32 to vector<2x128xf32>
    %388 = arith.mulf %387, %386 : vector<2x128xf32>
    %389 = math.tanh %388 : vector<2x128xf32>
    %cst_121 = arith.constant 1.000000e+00 : f32
    %390 = vector.broadcast %cst_121 : f32 to vector<2x128xf32>
    %391 = arith.addf %389, %390 : vector<2x128xf32>
    %cst_122 = arith.constant 5.000000e-01 : f32
    %392 = vector.broadcast %cst_122 : f32 to vector<2x128xf32>
    %393 = arith.mulf %392, %391 : vector<2x128xf32>
    %394 = math.tanh %386 : vector<2x128xf32>
    %395 = vector.extract_strided_slice %393 {offsets = [0, 0], sizes = [2, 32], strides = [1, 1]} : vector<2x128xf32> to vector<2x32xf32>
    %396 = vector.extract_strided_slice %393 {offsets = [0, 32], sizes = [2, 32], strides = [1, 1]} : vector<2x128xf32> to vector<2x32xf32>
    %397 = vector.extract_strided_slice %393 {offsets = [0, 96], sizes = [2, 32], strides = [1, 1]} : vector<2x128xf32> to vector<2x32xf32>
    %398 = vector.extract_strided_slice %394 {offsets = [0, 64], sizes = [2, 32], strides = [1, 1]} : vector<2x128xf32> to vector<2x32xf32>
    %399 = arith.mulf %396, %374 : vector<2x32xf32>
    %400 = arith.mulf %395, %398 : vector<2x32xf32>
    %401 = arith.addf %399, %400 : vector<2x32xf32>
    %402 = math.tanh %401 : vector<2x32xf32>
    %403 = arith.mulf %397, %402 : vector<2x32xf32>
    %404 = arith.index_cast %c7_i32_116 : i32 to index
    %c0_123 = arith.constant 0 : index
    %c0_124 = arith.constant 0 : index
    %405 = vector.load %arg3[%404, %c0_123, %c0_124] : memref<8x2x32xf32, #tpu.memory_space<vmem>>, vector<1x2x32xf32>
    %406 = vector.shape_cast %405 : vector<1x2x32xf32> to vector<2x32xf32>
    %407 = vector.shape_cast %403 : vector<2x32xf32> to vector<1x2x32xf32>
    tpu.vector_store %arg3[%404, %c0_123, %c0_124], %407 {strides = array<i32>} : memref<8x2x32xf32, #tpu.memory_space<vmem>>, vector<1x2x32xf32>,
    %c8_i32_125 = arith.constant 8 : i32
    %c0_126 = arith.constant 0 : index
    %c0_127 = arith.constant 0 : index
    %c0_128 = arith.constant 0 : index
    %408 = vector.load %arg4[%c0_126, %c0_127, %c0_128] : memref<2x2x32xf32, #tpu.memory_space<vmem>>, vector<1x2x32xf32>
    %409 = vector.shape_cast %408 : vector<1x2x32xf32> to vector<2x32xf32>
    %410 = vector.shape_cast %403 : vector<2x32xf32> to vector<1x2x32xf32>
    tpu.vector_store %arg4[%c0_126, %c0_127, %c0_128], %410 {strides = array<i32>} : memref<2x2x32xf32, #tpu.memory_space<vmem>>, vector<1x2x32xf32>,
    %c1_129 = arith.constant 1 : index
    %c0_130 = arith.constant 0 : index
    %c0_131 = arith.constant 0 : index
    %411 = vector.load %arg4[%c1_129, %c0_130, %c0_131] : memref<2x2x32xf32, #tpu.memory_space<vmem>>, vector<1x2x32xf32>
    %412 = vector.shape_cast %411 : vector<1x2x32xf32> to vector<2x32xf32>
    %413 = vector.shape_cast %401 : vector<2x32xf32> to vector<1x2x32xf32>
    tpu.vector_store %arg4[%c1_129, %c0_130, %c0_131], %413 {strides = array<i32>} : memref<2x2x32xf32, #tpu.memory_space<vmem>>, vector<1x2x32xf32>,
    return
  }
}

</mosaic_0001>

<bundles_post_ra>
// kernel: model_forward.1
= control target key start
LH: loop header
LB: loop body
LE: loop exit
PB: predicated region body
PF: predicated region fallthrough
CT: control target
= control target key end

     0   :  { %v1559_v0 = vmov 0.0   ;;  %vm1560_vm0 = vmmov 0   ;;  %v1561_v7 = vmov 0   ;;  %s1562_s25 = smov 64   ;;  %s1563_s26 = smov 32   ;;  %vm31_vm1 = vcmask 261120   ;;  %s1922_s2 = inlined_call_operand.vmem [shape: f32[2,32,128], index: 2, kind: input, shape index: {}]   ;;  %s1923_s0 = inlined_call_operand.vmem [shape: f32[8,2,128], index: 0, kind: input, shape index: {}]   ;;  %s1924_s1 = inlined_call_operand.vmem [shape: f32[8,2,128], index: 1, kind: input, shape index: {}]   ;;  %s1925_s3 = inlined_call_operand.vmem [shape: f32[8,2,32], index: 3, kind: output, shape index: {0}]   ;;  %s1926_s4 = inlined_call_operand.vmem [shape: f32[2,2,32], index: 4, kind: output, shape index: {1}]  }
   0x1   :  { %1329 = vmatprep.subr.bf16.mxu0 %v1559_v0  ;;  %v17_v1 = vld [vmem:[%s1922_s2] sm:$0xff]  ;;  %v18_v2 = vld [vmem:[%s1922_s2 + $0x8] sm:$0xff]  ;;  %v19_v3 = vld [vmem:[%s1922_s2 + $0x10] sm:$0xff]  ;;  %1333 = vmatprep.mubr.msk.bf16.mxu0 %vm1560_vm0, %v1559_v0  ;;  %vm677_vm2 = vcmask 254976  }
   0x2   :  { %v1602_v4 = vpack.c.bf16 %v18_v2, %v17_v1  ;;  %v20_v5 = vld [vmem:[%s1922_s2 + $0x18] sm:$0xff]  ;;  %1337 = vmatprep.subr.bf16.mxu1 %v1559_v0  ;;  %1341 = vmatprep.mubr.msk.bf16.mxu1 %vm1560_vm0, %v1559_v0  ;;  %v30_v8 = vld [vmem:[%s1923_s0] sm:$0x3]  ;;  %v1244_v29 = vld [vmem:[%s1923_s0 + $0x2] sm:$0x3] }
   0x3   :  { %v1611_v6 = vpack.c.bf16 %v20_v5, %v19_v3  ;;  %v1246_v50 = vld [vmem:[%s1923_s0 + $0x4] sm:$0x3] }
   0x4   :  { %1330 = vmatpush3.bf16.msra.mxu0 %v1602_v4  ;;  %1338 = vmatpush3.bf16.msra.mxu1 %v1602_v4 }
   0x5   :  { %1331 = vmatprep.subr.bf16.mxu0 %v1559_v0  ;;  %1339 = vmatprep.subr.bf16.mxu1 %v1559_v0 }
   0x8   :  { %1332 = vmatpush3.bf16.msra.mxu0 %v1611_v6  ;;  %1340 = vmatpush3.bf16.msra.mxu1 %v1611_v6 }
   0x9   :  { %1345 = vmatprep.subr.bf16.mxu0 %v1559_v0  ;;  %1353 = vmatprep.subr.bf16.mxu1 %v1559_v0 }
   0xb   :  { %1334 = vmatmul.mubr.bf16.vlgmr.msra.gmra.mrb[0].mxu0 %v1561_v7 }
   0xc   :  { %1346 = vmatpush3.bf16.msra.mxu0 %v1602_v4  ;;  %1349 = vmatprep.mubr.msk.bf16.mxu0 %vm1560_vm0, %v1559_v0 }
   0xd   :  { %1347 = vmatprep.subr.bf16.mxu0 %v1559_v0 }
  0x10   :  { %1348 = vmatpush3.bf16.msra.mxu0 %v1611_v6 }
  0x11   :  { %1361 = vmatprep.subr.bf16.mxu0 %v1559_v0 }
  0xde   :  { %v69_v9 = vpop.f32.mrb[0].mxu0 }
  0xdf   :  { %v75_v10 = vadd.f32 %v69_v9, %v30_v8  ;;  %v1335_v11 = vpop.f32.mrb[1].mxu0 }
  0xe0   :  { %v72_v12 = vpop.f32.mrb[2].mxu0 }
  0xe1   :  { %1463 = vtanh.f32 %v75_v10  ;;  %v1336_v13 = vpop.f32.mrb[3].mxu0  ;;  %v76_v15 = vmul.f32 0.5, %v75_v10  ;;  %v1248_v10 = vld [vmem:[%s1923_s0 + $0x6] sm:$0x3] }
  0xe3   :  { %1465 = vtanh.f32 %v76_v15 }
  0xeb   :  { %v1464_v14 = vpop.eup %1463 }
  0xec   :  { %83 = vrot.lane.b32.xlu0 %v1464_v14, %s1562_s25 }
  0xed   :  { %v1466_v16 = vpop.eup %1465 }
  0xee   :  { %v78_v17 = vadd.f32 1.0, %v1466_v16 }
  0xf0   :  { %v79_v18 = vmul.f32 0.5, %v78_v17 }
  0xf2   :  { %v81_v21 = vmul.f32 0.0, %v79_v18 }
 0x15e   :  { %v84_v19 = vpop.permute.xlu0 %83 }
 0x15f   :  { %v86_v20 = vmul.f32 %v84_v19, %v79_v18 }
 0x161   :  { %88 = vrot.lane.b32.xlu0 %v86_v20, %s1563_s26 }
 0x1d3   :  { %v89_v22 = vpop.permute.xlu0 %88 }
 0x1d4   :  { %v91_v23 = vadd.f32 %v89_v22, %v81_v21 }
 0x1d6   :  { %1467 = vtanh.f32 %v91_v23 }
 0x1e0   :  { %v1468_v24 = vpop.eup %1467 }
 0x1e1   :  { %94 = vrot.lane.b32.xlu1 %v1468_v24, %s1562_s25 }
 0x253   :  { %v95_v25 = vpop.permute.xlu1 %94 }
 0x254   :  { %v97_v26 = vmul.f32 %v95_v25, %v79_v18 }
 0x256   :  { %v100_v27 = vpack.c.bf16 %v97_v26, %v97_v26 }
 0x258   :  { %102 = vrot.lane.b32.xlu1 %v100_v27, %s1563_s26 }
 0x2ca   :  { %v103_v28 = vpop.permute.xlu1 %102 }
 0x2cb   :  { %1342 = vmatmul.mubr.msk.bf16.vlgmr.msra.gmra.mrb[0].mxu1 %vm31_vm1, %v103_v28 }
 0x2cc   :  { %1354 = vmatpush3.bf16.msra.mxu1 %v1602_v4  ;;  %1357 = vmatprep.mubr.msk.bf16.mxu1 %vm1560_vm0, %v1559_v0 }
 0x2cd   :  { %1355 = vmatprep.subr.bf16.mxu1 %v1559_v0 }
 0x2d0   :  { %1356 = vmatpush3.bf16.msra.mxu1 %v1611_v6 }
 0x2d1   :  { %1369 = vmatprep.subr.bf16.mxu1 %v1559_v0 }
 0x39e   :  { %v141_v30 = vpop.f32.mrb[0].mxu1 }
 0x39f   :  { %v147_v31 = vadd.f32 %v1244_v29, %v141_v30  ;;  %v1343_v32 = vpop.f32.mrb[1].mxu1 }
 0x3a0   :  { %v144_v33 = vpop.f32.mrb[2].mxu1 }
 0x3a1   :  { %1469 = vtanh.f32 %v147_v31  ;;  %v1344_v34 = vpop.f32.mrb[3].mxu1  ;;  %v148_v36 = vmul.f32 0.5, %v147_v31  ;;  %v1250_v31 = vld [vmem:[%s1923_s0 + $0x8] sm:$0x3] }
 0x3a3   :  { %1471 = vtanh.f32 %v148_v36 }
 0x3ab   :  { %v1470_v35 = vpop.eup %1469 }
 0x3ac   :  { %155 = vrot.lane.b32.xlu0 %v1470_v35, %s1562_s25 }
 0x3ad   :  { %v1472_v37 = vpop.eup %1471 }
 0x3ae   :  { %v150_v38 = vadd.f32 1.0, %v1472_v37 }
 0x3b0   :  { %v151_v39 = vmul.f32 0.5, %v150_v38 }
 0x3b2   :  { %v153_v42 = vmul.f32 %v151_v39, %v91_v23 }
 0x41e   :  { %v156_v40 = vpop.permute.xlu0 %155 }
 0x41f   :  { %v158_v41 = vmul.f32 %v156_v40, %v151_v39 }
 0x421   :  { %160 = vrot.lane.b32.xlu1 %v158_v41, %s1563_s26 }
 0x493   :  { %v161_v43 = vpop.permute.xlu1 %160 }
 0x494   :  { %v163_v44 = vadd.f32 %v161_v43, %v153_v42 }
 0x496   :  { %1473 = vtanh.f32 %v163_v44 }
 0x4a0   :  { %v1474_v45 = vpop.eup %1473 }
 0x4a1   :  { %166 = vrot.lane.b32.xlu0 %v1474_v45, %s1562_s25 }
 0x513   :  { %v167_v46 = vpop.permute.xlu0 %166 }
 0x514   :  { %v169_v47 = vmul.f32 %v167_v46, %v151_v39 }
 0x516   :  { %v172_v48 = vpack.c.bf16 %v169_v47, %v169_v47 }
 0x518   :  { %174 = vrot.lane.b32.xlu1 %v172_v48, %s1563_s26 }
 0x58a   :  { %v175_v49 = vpop.permute.xlu1 %174 }
 0x58b   :  { %1350 = vmatmul.mubr.msk.bf16.vlgmr.msra.gmra.mrb[4].mxu0 %vm31_vm1, %v175_v49 }
 0x58c   :  { %1362 = vmatpush3.bf16.msra.mxu0 %v1602_v4  ;;  %1365 = vmatprep.mubr.msk.bf16.mxu0 %vm1560_vm0, %v1559_v0 }
 0x58d   :  { %1363 = vmatprep.subr.bf16.mxu0 %v1559_v0 }
 0x590   :  { %1364 = vmatpush3.bf16.msra.mxu0 %v1611_v6 }
 0x591   :  { %1377 = vmatprep.subr.bf16.mxu0 %v1559_v0 }
 0x65e   :  { %v213_v51 = vpop.f32.mrb[4].mxu0 }
 0x65f   :  { %v219_v52 = vadd.f32 %v1246_v50, %v213_v51  ;;  %v1351_v53 = vpop.f32.mrb[5].mxu0 }
 0x660   :  { %v216_v54 = vpop.f32.mrb[6].mxu0 }
 0x661   :  { %1475 = vtanh.f32 %v219_v52  ;;  %v1352_v55 = vpop.f32.mrb[7].mxu0  ;;  %v220_v57 = vmul.f32 0.5, %v219_v52  ;;  %v1252_v52 = vld [vmem:[%s1923_s0 + $0xa] sm:$0x3] }
 0x663   :  { %1477 = vtanh.f32 %v220_v57 }
 0x66b   :  { %v1476_v56 = vpop.eup %1475 }
 0x66c   :  { %227 = vrot.lane.b32.xlu0 %v1476_v56, %s1562_s25 }
 0x66d   :  { %v1478_v58 = vpop.eup %1477 }
 0x66e   :  { %v222_v59 = vadd.f32 1.0, %v1478_v58 }
 0x670   :  { %v223_v60 = vmul.f32 0.5, %v222_v59 }
 0x672   :  { %v225_v63 = vmul.f32 %v223_v60, %v163_v44 }
 0x6de   :  { %v228_v61 = vpop.permute.xlu0 %227 }
 0x6df   :  { %v230_v62 = vmul.f32 %v228_v61, %v223_v60 }
 0x6e1   :  { %232 = vrot.lane.b32.xlu1 %v230_v62, %s1563_s26 }
 0x753   :  { %v233_v1 = vpop.permute.xlu1 %232 }
 0x754   :  { %v235_v2 = vadd.f32 %v233_v1, %v225_v63 }
 0x756   :  { %1479 = vtanh.f32 %v235_v2 }
 0x760   :  { %v1480_v3 = vpop.eup %1479 }
 0x761   :  { %238 = vrot.lane.b32.xlu0 %v1480_v3, %s1562_s25 }
 0x7d3   :  { %v239_v5 = vpop.permute.xlu0 %238 }
 0x7d4   :  { %v241_v7 = vmul.f32 %v239_v5, %v223_v60 }
 0x7d6   :  { %v244_v8 = vpack.c.bf16 %v241_v7, %v241_v7 }
 0x7d8   :  { %246 = vrot.lane.b32.xlu1 %v244_v8, %s1563_s26 }
 0x84a   :  { %v247_v9 = vpop.permute.xlu1 %246 }
 0x84b   :  { %1358 = vmatmul.mubr.msk.bf16.vlgmr.msra.gmra.mrb[4].mxu1 %vm31_vm1, %v247_v9 }
 0x84c   :  { %1370 = vmatpush3.bf16.msra.mxu1 %v1602_v4  ;;  %1373 = vmatprep.mubr.msk.bf16.mxu1 %vm1560_vm0, %v1559_v0 }
 0x84d   :  { %1371 = vmatprep.subr.bf16.mxu1 %v1559_v0 }
 0x850   :  { %1372 = vmatpush3.bf16.msra.mxu1 %v1611_v6 }
 0x851   :  { %1385 = vmatprep.subr.bf16.mxu1 %v1559_v0 }
 0x91e   :  { %v285_v11 = vpop.f32.mrb[4].mxu1 }
 0x91f   :  { %v291_v12 = vadd.f32 %v1248_v10, %v285_v11  ;;  %v1359_v13 = vpop.f32.mrb[5].mxu1  ;;  %v1254_v10 = vld [vmem:[%s1923_s0 + $0xc] sm:$0x3] }
 0x920   :  { %v288_v14 = vpop.f32.mrb[6].mxu1 }
 0x921   :  { %1481 = vtanh.f32 %v291_v12  ;;  %v1360_v15 = vpop.f32.mrb[7].mxu1  ;;  %v292_v17 = vmul.f32 0.5, %v291_v12 }
 0x923   :  { %1483 = vtanh.f32 %v292_v17 }
 0x92b   :  { %v1482_v16 = vpop.eup %1481 }
 0x92c   :  { %299 = vrot.lane.b32.xlu0 %v1482_v16, %s1562_s25 }
 0x92d   :  { %v1484_v18 = vpop.eup %1483 }
 0x92e   :  { %v294_v19 = vadd.f32 1.0, %v1484_v18 }
 0x930   :  { %v295_v20 = vmul.f32 0.5, %v294_v19 }
 0x932   :  { %v297_v23 = vmul.f32 %v295_v20, %v235_v2 }
 0x99e   :  { %v300_v21 = vpop.permute.xlu0 %299 }
 0x99f   :  { %v302_v22 = vmul.f32 %v300_v21, %v295_v20 }
 0x9a1   :  { %304 = vrot.lane.b32.xlu1 %v302_v22, %s1563_s26 }
 0xa13   :  { %v305_v24 = vpop.permute.xlu1 %304 }
 0xa14   :  { %v307_v25 = vadd.f32 %v305_v24, %v297_v23 }
 0xa16   :  { %1485 = vtanh.f32 %v307_v25 }
 0xa20   :  { %v1486_v26 = vpop.eup %1485 }
 0xa21   :  { %310 = vrot.lane.b32.xlu0 %v1486_v26, %s1562_s25 }
 0xa93   :  { %v311_v27 = vpop.permute.xlu0 %310 }
 0xa94   :  { %v313_v28 = vmul.f32 %v311_v27, %v295_v20 }
 0xa96   :  { %v316_v29 = vpack.c.bf16 %v313_v28, %v313_v28 }
 0xa98   :  { %318 = vrot.lane.b32.xlu1 %v316_v29, %s1563_s26 }
 0xb0a   :  { %v319_v30 = vpop.permute.xlu1 %318 }
 0xb0b   :  { %1366 = vmatmul.mubr.msk.bf16.vlgmr.msra.gmra.mrb[8].mxu0 %vm31_vm1, %v319_v30 }
 0xb0c   :  { %1378 = vmatpush3.bf16.msra.mxu0 %v1602_v4  ;;  %1381 = vmatprep.mubr.msk.bf16.mxu0 %vm1560_vm0, %v1559_v0 }
 0xb0d   :  { %1379 = vmatprep.subr.bf16.mxu0 %v1559_v0 }
 0xb10   :  { %1380 = vmatpush3.bf16.msra.mxu0 %v1611_v6 }
 0xb11   :  { %1393 = vmatprep.subr.bf16.mxu0 %v1559_v0 }
 0xbde   :  { %v357_v32 = vpop.f32.mrb[8].mxu0 }
 0xbdf   :  { %v363_v33 = vadd.f32 %v1250_v31, %v357_v32  ;;  %v1367_v34 = vpop.f32.mrb[9].mxu0  ;;  %v1256_v31 = vld [vmem:[%s1923_s0 + $0xe] sm:$0x3] }
 0xbe0   :  { %v360_v35 = vpop.f32.mrb[10].mxu0 }
 0xbe1   :  { %1487 = vtanh.f32 %v363_v33  ;;  %v1368_v36 = vpop.f32.mrb[11].mxu0  ;;  %v364_v38 = vmul.f32 0.5, %v363_v33 }
 0xbe3   :  { %1489 = vtanh.f32 %v364_v38 }
 0xbeb   :  { %v1488_v37 = vpop.eup %1487 }
 0xbec   :  { %371 = vrot.lane.b32.xlu0 %v1488_v37, %s1562_s25 }
 0xbed   :  { %v1490_v39 = vpop.eup %1489 }
 0xbee   :  { %v366_v40 = vadd.f32 1.0, %v1490_v39 }
 0xbf0   :  { %v367_v41 = vmul.f32 0.5, %v366_v40 }
 0xbf2   :  { %v369_v44 = vmul.f32 %v367_v41, %v307_v25 }
 0xc5e   :  { %v372_v42 = vpop.permute.xlu0 %371 }
 0xc5f   :  { %v374_v43 = vmul.f32 %v372_v42, %v367_v41 }
 0xc61   :  { %376 = vrot.lane.b32.xlu1 %v374_v43, %s1563_s26 }
 0xcd3   :  { %v377_v45 = vpop.permute.xlu1 %376 }
 0xcd4   :  { %v379_v46 = vadd.f32 %v377_v45, %v369_v44 }
 0xcd6   :  { %1491 = vtanh.f32 %v379_v46 }
 0xce0   :  { %v1492_v47 = vpop.eup %1491 }
 0xce1   :  { %382 = vrot.lane.b32.xlu0 %v1492_v47, %s1562_s25  ;;  %v1240_v47 = vld [vmem:[%s1922_s2 + $0x20] sm:$0xff] }
 0xd53   :  { %v383_v48 = vpop.permute.xlu0 %382 }
 0xd54   :  { %v385_v49 = vmul.f32 %v383_v48, %v367_v41  ;;  %v1241_v48 = vld [vmem:[%s1922_s2 + $0x28] sm:$0xff] }
 0xd56   :  { %v388_v50 = vpack.c.bf16 %v385_v49, %v385_v49  ;;  %v1242_v49 = vld [vmem:[%s1922_s2 + $0x30] sm:$0xff] }
 0xd58   :  { %390 = vrot.lane.b32.xlu1 %v388_v50, %s1563_s26  ;;  %v1730_v50 = vpack.c.bf16 %v1241_v48, %v1240_v47 }
 0xdca   :  { %v391_v51 = vpop.permute.xlu1 %390 }
 0xdcb   :  { %1374 = vmatmul.mubr.msk.bf16.vlgmr.msra.gmra.mrb[8].mxu1 %vm31_vm1, %v391_v51  ;;  %v1243_v51 = vld [vmem:[%s1922_s2 + $0x38] sm:$0xff] }
 0xdcc   :  { %1386 = vmatpush3.bf16.msra.mxu1 %v1602_v4  ;;  %1389 = vmatprep.mubr.msk.bf16.mxu1 %vm1560_vm0, %v1559_v0 }
 0xdcd   :  { %1387 = vmatprep.subr.bf16.mxu1 %v1559_v0 }
 0xdd0   :  { %1388 = vmatpush3.bf16.msra.mxu1 %v1611_v6 }
 0xdd1   :  { %1401 = vmatprep.subr.bf16.mxu1 %v1559_v0 }
 0xe9e   :  { %v429_v53 = vpop.f32.mrb[8].mxu1 }
 0xe9f   :  { %v435_v54 = vadd.f32 %v1252_v52, %v429_v53  ;;  %v1375_v55 = vpop.f32.mrb[9].mxu1  ;;  %v1736_v52 = vpack.c.bf16 %v1243_v51, %v1242_v49 }
 0xea0   :  { %v432_v56 = vpop.f32.mrb[10].mxu1 }
 0xea1   :  { %1493 = vtanh.f32 %v435_v54  ;;  %v1376_v57 = vpop.f32.mrb[11].mxu1  ;;  %v436_v58 = vmul.f32 0.5, %v435_v54 }
 0xea3   :  { %1495 = vtanh.f32 %v436_v58 }
 0xeab   :  { %v1494_v4 = vpop.eup %1493 }
 0xeac   :  { %443 = vrot.lane.b32.xlu0 %v1494_v4, %s1562_s25  ;;  %v602_v4 = vld [vmem:[%s1924_s1] sm:$0x3] }
 0xead   :  { %v1496_v59 = vpop.eup %1495 }
 0xeae   :  { %v438_v60 = vadd.f32 1.0, %v1496_v59 }
 0xeb0   :  { %v439_v6 = vmul.f32 0.5, %v438_v60 }
 0xeb2   :  { %v441_v63 = vmul.f32 %v439_v6, %v379_v46 }
 0xf1e   :  { %v444_v61 = vpop.permute.xlu0 %443 }
 0xf1f   :  { %v446_v62 = vmul.f32 %v444_v61, %v439_v6 }
 0xf21   :  { %448 = vrot.lane.b32.xlu1 %v446_v62, %s1563_s26 }
 0xf93   :  { %v449_v1 = vpop.permute.xlu1 %448 }
 0xf94   :  { %v451_v2 = vadd.f32 %v449_v1, %v441_v63 }
 0xf96   :  { %1497 = vtanh.f32 %v451_v2 }
 0xfa0   :  { %v1498_v3 = vpop.eup %1497 }
 0xfa1   :  { %454 = vrot.lane.b32.xlu0 %v1498_v3, %s1562_s25 }
0x1013   :  { %v455_v5 = vpop.permute.xlu0 %454 }
0x1014   :  { %v457_v7 = vmul.f32 %v455_v5, %v439_v6 }
0x1016   :  { %v460_v8 = vpack.c.bf16 %v457_v7, %v457_v7 }
0x1018   :  { %462 = vrot.lane.b32.xlu1 %v460_v8, %s1563_s26 }
0x108a   :  { %v463_v9 = vpop.permute.xlu1 %462 }
0x108b   :  { %1382 = vmatmul.mubr.msk.bf16.vlgmr.msra.gmra.mrb[12].mxu0 %vm31_vm1, %v463_v9 }
0x108c   :  { %1397 = vmatprep.mubr.msk.bf16.mxu0 %vm1560_vm0, %v1559_v0  ;;  %1394 = vmatpush3.bf16.msra.mxu0 %v1730_v50 }
0x108d   :  { %1395 = vmatprep.subr.bf16.mxu0 %v1559_v0 }
0x1090   :  { %1396 = vmatpush3.bf16.msra.mxu0 %v1736_v52 }
0x1091   :  { %1409 = vmatprep.subr.bf16.mxu0 %v1559_v0 }
0x115e   :  { %v501_v11 = vpop.f32.mrb[12].mxu0 }
0x115f   :  { %v507_v12 = vadd.f32 %v1254_v10, %v501_v11  ;;  %v1383_v13 = vpop.f32.mrb[13].mxu0 }
0x1160   :  { %v504_v14 = vpop.f32.mrb[14].mxu0 }
0x1161   :  { %1499 = vtanh.f32 %v507_v12  ;;  %v1384_v15 = vpop.f32.mrb[15].mxu0  ;;  %v508_v17 = vmul.f32 0.5, %v507_v12 }
0x1163   :  { %1501 = vtanh.f32 %v508_v17 }
0x116b   :  { %v1500_v16 = vpop.eup %1499 }
0x116c   :  { %515 = vrot.lane.b32.xlu0 %v1500_v16, %s1562_s25  ;;  %v1259_v16 = vld [vmem:[%s1924_s1 + $0x2] sm:$0x3] }
0x116d   :  { %v1502_v18 = vpop.eup %1501 }
0x116e   :  { %v510_v19 = vadd.f32 1.0, %v1502_v18 }
0x1170   :  { %v511_v20 = vmul.f32 0.5, %v510_v19 }
0x1172   :  { %v513_v23 = vmul.f32 %v511_v20, %v451_v2 }
0x11de   :  { %v516_v21 = vpop.permute.xlu0 %515 }
0x11df   :  { %v518_v22 = vmul.f32 %v516_v21, %v511_v20 }
0x11e1   :  { %520 = vrot.lane.b32.xlu1 %v518_v22, %s1563_s26 }
0x1253   :  { %v521_v24 = vpop.permute.xlu1 %520 }
0x1254   :  { %v523_v25 = vadd.f32 %v521_v24, %v513_v23 }
0x1256   :  { %1503 = vtanh.f32 %v523_v25 }
0x1260   :  { %v1504_v26 = vpop.eup %1503 }
0x1261   :  { %526 = vrot.lane.b32.xlu0 %v1504_v26, %s1562_s25 }
0x12d3   :  { %v527_v27 = vpop.permute.xlu0 %526 }
0x12d4   :  { %v529_v28 = vmul.f32 %v527_v27, %v511_v20 }
0x12d6   :  { %v532_v29 = vpack.c.bf16 %v529_v28, %v529_v28 }
0x12d8   :  { %534 = vrot.lane.b32.xlu1 %v532_v29, %s1563_s26 }
0x134a   :  { %v535_v30 = vpop.permute.xlu1 %534 }
0x134b   :  { %1390 = vmatmul.mubr.msk.bf16.vlgmr.msra.gmra.mrb[12].mxu1 %vm31_vm1, %v535_v30 }
0x134c   :  { %1405 = vmatprep.mubr.msk.bf16.mxu1 %vm1560_vm0, %v1559_v0  ;;  %1402 = vmatpush3.bf16.msra.mxu1 %v1730_v50 }
0x134d   :  { %1403 = vmatprep.subr.bf16.mxu1 %v1559_v0 }
0x1350   :  { %1404 = vmatpush3.bf16.msra.mxu1 %v1736_v52 }
0x1351   :  { %1417 = vmatprep.subr.bf16.mxu1 %v1559_v0 }
0x141e   :  { %v573_v32 = vpop.f32.mrb[12].mxu1 }
0x141f   :  { %v579_v33 = vadd.f32 %v1256_v31, %v573_v32  ;;  %v1391_v34 = vpop.f32.mrb[13].mxu1 }
0x1420   :  { %v576_v35 = vpop.f32.mrb[14].mxu1 }
0x1421   :  { %1505 = vtanh.f32 %v579_v33  ;;  %v1392_v36 = vpop.f32.mrb[15].mxu1  ;;  %v580_v38 = vmul.f32 0.5, %v579_v33 }
0x1423   :  { %1507 = vtanh.f32 %v580_v38 }
0x142b   :  { %v1506_v37 = vpop.eup %1505 }
0x142c   :  { %587 = vrot.lane.b32.xlu0 %v1506_v37, %s1562_s25  ;;  %v1262_v37 = vld [vmem:[%s1924_s1 + $0x4] sm:$0x3] }
0x142d   :  { %v1508_v39 = vpop.eup %1507 }
0x142e   :  { %v582_v40 = vadd.f32 1.0, %v1508_v39 }
0x1430   :  { %v583_v41 = vmul.f32 0.5, %v582_v40 }
0x1432   :  { %v585_v44 = vmul.f32 %v583_v41, %v523_v25 }
0x149e   :  { %v588_v42 = vpop.permute.xlu0 %587 }
0x149f   :  { %v590_v43 = vmul.f32 %v588_v42, %v583_v41 }
0x14a1   :  { %592 = vrot.lane.b32.xlu1 %v590_v43, %s1563_s26 }
0x1513   :  { %v593_v45 = vpop.permute.xlu1 %592 }
0x1514   :  { %v595_v46 = vadd.f32 %v593_v45, %v585_v44 }
0x1516   :  { %1509 = vtanh.f32 %v595_v46 }
0x1520   :  { %v1510_v53 = vpop.eup %1509 }
0x1521   :  { %598 = vrot.lane.b32.xlu0 %v1510_v53, %s1562_s25 }
0x1593   :  { %v599_v54 = vpop.permute.xlu0 %598 }
0x1594   :  { %v601_v55 = vmul.f32 %v599_v54, %v583_v41 }
0x1596   :  { %v603_v56 = vpack.c.bf16 %v601_v55, %v601_v55 }
0x1598   :  { %605 = vrot.lane.b32.xlu1 %v603_v56, %s1563_s26 }
0x160a   :  { %v606_v57 = vpop.permute.xlu1 %605 }
0x160b   :  { %1398 = vmatmul.mubr.msk.bf16.vlgmr.msra.gmra.mrb[16].mxu0 %vm31_vm1, %v606_v57 }
0x160c   :  { %1410 = vmatpush3.bf16.msra.mxu0 %v1730_v50  ;;  %1413 = vmatprep.mubr.msk.bf16.mxu0 %vm1560_vm0, %v1559_v0 }
0x160d   :  { %1411 = vmatprep.subr.bf16.mxu0 %v1559_v0 }
0x1610   :  { %1412 = vmatpush3.bf16.msra.mxu0 %v1736_v52 }
0x1611   :  { %1425 = vmatprep.subr.bf16.mxu0 %v1559_v0 }
0x16de   :  { %v644_v58 = vpop.f32.mrb[16].mxu0 }
0x16df   :  { %v650_v59 = vadd.f32 %v644_v58, %v602_v4  ;;  %v1399_v60 = vpop.f32.mrb[17].mxu0 }
0x16e0   :  { %v647_v6 = vpop.f32.mrb[18].mxu0 }
0x16e1   :  { %1511 = vtanh.f32 %v650_v59  ;;  %v1400_v61 = vpop.f32.mrb[19].mxu0  ;;  %v651_v63 = vmul.f32 0.5, %v650_v59  ;;  %v1265_v59 = vld [vmem:[%s1924_s1 + $0x6] sm:$0x3] }
0x16e3   :  { %1513 = vtanh.f32 %v651_v63 }
0x16eb   :  { %v1512_v62 = vpop.eup %1511 }
0x16ec   :  { %658 = vrot.lane.b32.xlu0 %v1512_v62, %s1562_s25 }
0x16ed   :  { %v1514_v1 = vpop.eup %1513 }
0x16ee   :  { %v653_v2 = vadd.f32 1.0, %v1514_v1 }
0x16f0   :  { %v654_v3 = vmul.f32 0.5, %v653_v2 }
0x16f2   :  { %v656_v8 = vmul.f32 %v654_v3, %v595_v46 }
0x175e   :  { %v659_v5 = vpop.permute.xlu0 %658 }
0x175f   :  { %v661_v7 = vmul.f32 %v659_v5, %v654_v3 }
0x1761   :  { %663 = vrot.lane.b32.xlu1 %v661_v7, %s1563_s26 }
0x17d3   :  { %v664_v9 = vpop.permute.xlu1 %663 }
0x17d4   :  { %v666_v10 = vadd.f32 %v664_v9, %v656_v8 }
0x17d6   :  { %1515 = vtanh.f32 %v666_v10 }
0x17e0   :  { %v1516_v11 = vpop.eup %1515 }
0x17e1   :  { %669 = vrot.lane.b32.xlu0 %v1516_v11, %s1562_s25 }
0x1853   :  { %v670_v12 = vpop.permute.xlu0 %669 }
0x1854   :  { %v1760_v13 = vmul.f32 %v670_v12, %v654_v3 }
0x1856   :  { %v681_v14 = vpack.c.bf16 %v1760_v13, %v1760_v13 }
0x1858   :  { %683 = vrot.lane.b32.xlu1 %v681_v14, %s1563_s26 }
0x18ca   :  { %v684_v15 = vpop.permute.xlu1 %683 }
0x18cb   :  { %1406 = vmatmul.mubr.msk.bf16.vlgmr.msra.gmra.mrb[16].mxu1 %vm31_vm1, %v684_v15 }
0x18cc   :  { %1418 = vmatpush3.bf16.msra.mxu1 %v1730_v50  ;;  %1421 = vmatprep.mubr.msk.bf16.mxu1 %vm1560_vm0, %v1559_v0 }
0x18cd   :  { %1419 = vmatprep.subr.bf16.mxu1 %v1559_v0 }
0x18d0   :  { %1420 = vmatpush3.bf16.msra.mxu1 %v1736_v52 }
0x18d1   :  { %1433 = vmatprep.subr.bf16.mxu1 %v1559_v0 }
0x199e   :  { %v722_v17 = vpop.f32.mrb[16].mxu1 }
0x199f   :  { %v728_v18 = vadd.f32 %v1259_v16, %v722_v17  ;;  %v1407_v19 = vpop.f32.mrb[17].mxu1 }
0x19a0   :  { %v725_v20 = vpop.f32.mrb[18].mxu1  ;;  %v1268_v19 = vld [vmem:[%s1924_s1 + $0x8] sm:$0x3] }
0x19a1   :  { %1517 = vtanh.f32 %v728_v18  ;;  %v1408_v21 = vpop.f32.mrb[19].mxu1  ;;  %v729_v23 = vmul.f32 0.5, %v728_v18 }
0x19a3   :  { %1519 = vtanh.f32 %v729_v23 }
0x19ab   :  { %v1518_v22 = vpop.eup %1517 }
0x19ac   :  { %736 = vrot.lane.b32.xlu0 %v1518_v22, %s1562_s25 }
0x19ad   :  { %v1520_v24 = vpop.eup %1519 }
0x19ae   :  { %v731_v25 = vadd.f32 1.0, %v1520_v24 }
0x19b0   :  { %v732_v26 = vmul.f32 0.5, %v731_v25 }
0x19b2   :  { %v734_v29 = vmul.f32 %v732_v26, %v666_v10 }
0x1a1e   :  { %v737_v27 = vpop.permute.xlu0 %736 }
0x1a1f   :  { %v739_v28 = vmul.f32 %v737_v27, %v732_v26 }
0x1a21   :  { %741 = vrot.lane.b32.xlu1 %v739_v28, %s1563_s26 }
0x1a93   :  { %v742_v30 = vpop.permute.xlu1 %741 }
0x1a94   :  { %v744_v31 = vadd.f32 %v742_v30, %v734_v29 }
0x1a96   :  { %1521 = vtanh.f32 %v744_v31 }
0x1aa0   :  { %v1522_v32 = vpop.eup %1521 }
0x1aa1   :  { %747 = vrot.lane.b32.xlu0 %v1522_v32, %s1562_s25 }
0x1b13   :  { %v748_v33 = vpop.permute.xlu0 %747 }
0x1b14   :  { %v1778_v34 = vmul.f32 %v748_v33, %v732_v26 }
0x1b16   :  { %v759_v35 = vpack.c.bf16 %v1778_v34, %v1778_v34 }
0x1b18   :  { %761 = vrot.lane.b32.xlu1 %v759_v35, %s1563_s26 }
0x1b8a   :  { %v762_v36 = vpop.permute.xlu1 %761 }
0x1b8b   :  { %1414 = vmatmul.mubr.msk.bf16.vlgmr.msra.gmra.mrb[20].mxu0 %vm31_vm1, %v762_v36 }
0x1b8c   :  { %1426 = vmatpush3.bf16.msra.mxu0 %v1730_v50  ;;  %1429 = vmatprep.mubr.msk.bf16.mxu0 %vm1560_vm0, %v1559_v0 }
0x1b8d   :  { %1427 = vmatprep.subr.bf16.mxu0 %v1559_v0 }
0x1b90   :  { %1428 = vmatpush3.bf16.msra.mxu0 %v1736_v52 }
0x1b91   :  { %1441 = vmatprep.subr.bf16.mxu0 %v1559_v0 }
0x1c5e   :  { %v800_v38 = vpop.f32.mrb[20].mxu0 }
0x1c5f   :  { %v806_v39 = vadd.f32 %v1262_v37, %v800_v38  ;;  %v1415_v40 = vpop.f32.mrb[21].mxu0 }
0x1c60   :  { %v803_v41 = vpop.f32.mrb[22].mxu0 }
0x1c61   :  { %1523 = vtanh.f32 %v806_v39  ;;  %v1416_v42 = vpop.f32.mrb[23].mxu0  ;;  %v807_v44 = vmul.f32 0.5, %v806_v39  ;;  %v1271_v41 = vld [vmem:[%s1924_s1 + $0xa] sm:$0x3] }
0x1c63   :  { %1525 = vtanh.f32 %v807_v44 }
0x1c6b   :  { %v1524_v43 = vpop.eup %1523 }
0x1c6c   :  { %814 = vrot.lane.b32.xlu0 %v1524_v43, %s1562_s25 }
0x1c6d   :  { %v1526_v45 = vpop.eup %1525 }
0x1c6e   :  { %v809_v46 = vadd.f32 1.0, %v1526_v45 }
0x1c70   :  { %v810_v47 = vmul.f32 0.5, %v809_v46 }
0x1c72   :  { %v812_v51 = vmul.f32 %v810_v47, %v744_v31 }
0x1cde   :  { %v815_v48 = vpop.permute.xlu0 %814 }
0x1cdf   :  { %v817_v49 = vmul.f32 %v815_v48, %v810_v47 }
0x1ce1   :  { %819 = vrot.lane.b32.xlu1 %v817_v49, %s1563_s26 }
0x1d53   :  { %v820_v53 = vpop.permute.xlu1 %819 }
0x1d54   :  { %v822_v54 = vadd.f32 %v820_v53, %v812_v51 }
0x1d56   :  { %1527 = vtanh.f32 %v822_v54 }
0x1d60   :  { %v1528_v55 = vpop.eup %1527 }
0x1d61   :  { %825 = vrot.lane.b32.xlu0 %v1528_v55, %s1562_s25 }
0x1dd3   :  { %v826_v56 = vpop.permute.xlu0 %825 }
0x1dd4   :  { %v1796_v57 = vmul.f32 %v826_v56, %v810_v47 }
0x1dd6   :  { %v837_v4 = vpack.c.bf16 %v1796_v57, %v1796_v57 }
0x1dd8   :  { %839 = vrot.lane.b32.xlu1 %v837_v4, %s1563_s26 }
0x1e4a   :  { %v840_v58 = vpop.permute.xlu1 %839 }
0x1e4b   :  { %1422 = vmatmul.mubr.msk.bf16.vlgmr.msra.gmra.mrb[20].mxu1 %vm31_vm1, %v840_v58 }
0x1e4c   :  { %1434 = vmatpush3.bf16.msra.mxu1 %v1730_v50  ;;  %1437 = vmatprep.mubr.msk.bf16.mxu1 %vm1560_vm0, %v1559_v0 }
0x1e4d   :  { %1435 = vmatprep.subr.bf16.mxu1 %v1559_v0 }
0x1e50   :  { %1436 = vmatpush3.bf16.msra.mxu1 %v1736_v52 }
0x1e51   :  { %1449 = vmatprep.subr.bf16.mxu1 %v1559_v0 }
0x1f1e   :  { %v878_v60 = vpop.f32.mrb[20].mxu1 }
0x1f1f   :  { %v884_v6 = vadd.f32 %v1265_v59, %v878_v60  ;;  %v1423_v61 = vpop.f32.mrb[21].mxu1 }
0x1f20   :  { %v881_v62 = vpop.f32.mrb[22].mxu1 }
0x1f21   :  { %1529 = vtanh.f32 %v884_v6  ;;  %v1424_v63 = vpop.f32.mrb[23].mxu1  ;;  %v885_v2 = vmul.f32 0.5, %v884_v6  ;;  %v1274_v6 = vld [vmem:[%s1924_s1 + $0xc] sm:$0x3] }
0x1f23   :  { %1531 = vtanh.f32 %v885_v2 }
0x1f2b   :  { %v1530_v1 = vpop.eup %1529 }
0x1f2c   :  { %892 = vrot.lane.b32.xlu0 %v1530_v1, %s1562_s25 }
0x1f2d   :  { %v1532_v3 = vpop.eup %1531 }
0x1f2e   :  { %v887_v5 = vadd.f32 1.0, %v1532_v3 }
0x1f30   :  { %v888_v7 = vmul.f32 0.5, %v887_v5 }
0x1f32   :  { %v890_v10 = vmul.f32 %v888_v7, %v822_v54 }
0x1f9e   :  { %v893_v8 = vpop.permute.xlu0 %892 }
0x1f9f   :  { %v895_v9 = vmul.f32 %v893_v8, %v888_v7 }
0x1fa1   :  { %897 = vrot.lane.b32.xlu1 %v895_v9, %s1563_s26 }
0x2013   :  { %v898_v11 = vpop.permute.xlu1 %897 }
0x2014   :  { %v900_v12 = vadd.f32 %v898_v11, %v890_v10 }
0x2016   :  { %1533 = vtanh.f32 %v900_v12 }
0x2020   :  { %v1534_v14 = vpop.eup %1533 }
0x2021   :  { %903 = vrot.lane.b32.xlu0 %v1534_v14, %s1562_s25 }
0x2093   :  { %v904_v15 = vpop.permute.xlu0 %903 }
0x2094   :  { %v1814_v16 = vmul.f32 %v904_v15, %v888_v7 }
0x2096   :  { %v915_v17 = vpack.c.bf16 %v1814_v16, %v1814_v16 }
0x2098   :  { %917 = vrot.lane.b32.xlu1 %v915_v17, %s1563_s26 }
0x210a   :  { %v918_v18 = vpop.permute.xlu1 %917 }
0x210b   :  { %1430 = vmatmul.mubr.msk.bf16.vlgmr.msra.gmra.mrb[24].mxu0 %vm31_vm1, %v918_v18 }
0x210c   :  { %1442 = vmatpush3.bf16.msra.mxu0 %v1730_v50  ;;  %1445 = vmatprep.mubr.msk.bf16.mxu0 %vm1560_vm0, %v1559_v0 }
0x210d   :  { %1443 = vmatprep.subr.bf16.mxu0 %v1559_v0 }
0x2110   :  { %1444 = vmatpush3.bf16.msra.mxu0 %v1736_v52 }
0x21de   :  { %v956_v20 = vpop.f32.mrb[24].mxu0 }
0x21df   :  { %v962_v21 = vadd.f32 %v1268_v19, %v956_v20  ;;  %v1431_v22 = vpop.f32.mrb[25].mxu0 }
0x21e0   :  { %v959_v23 = vpop.f32.mrb[26].mxu0  ;;  %v1277_v22 = vld [vmem:[%s1924_s1 + $0xe] sm:$0x3]  ;;  %s1564_s1 = smov 96  }
0x21e1   :  { %1535 = vtanh.f32 %v962_v21  ;;  %v1432_v24 = vpop.f32.mrb[27].mxu0  ;;  %v963_v26 = vmul.f32 0.5, %v962_v21 }
0x21e3   :  { %1537 = vtanh.f32 %v963_v26 }
0x21eb   :  { %v1536_v25 = vpop.eup %1535 }
0x21ec   :  { %970 = vrot.lane.b32.xlu0 %v1536_v25, %s1562_s25 }
0x21ed   :  { %v1538_v27 = vpop.eup %1537 }
0x21ee   :  { %v965_v28 = vadd.f32 1.0, %v1538_v27 }
0x21f0   :  { %v966_v29 = vmul.f32 0.5, %v965_v28 }
0x21f2   :  { %v968_v32 = vmul.f32 %v966_v29, %v900_v12 }
0x225e   :  { %v971_v30 = vpop.permute.xlu0 %970 }
0x225f   :  { %v973_v31 = vmul.f32 %v971_v30, %v966_v29 }
0x2261   :  { %975 = vrot.lane.b32.xlu1 %v973_v31, %s1563_s26 }
0x22d3   :  { %v976_v33 = vpop.permute.xlu1 %975 }
0x22d4   :  { %v978_v35 = vadd.f32 %v976_v33, %v968_v32 }
0x22d6   :  { %1539 = vtanh.f32 %v978_v35 }
0x22e0   :  { %v1540_v36 = vpop.eup %1539 }
0x22e1   :  { %981 = vrot.lane.b32.xlu0 %v1540_v36, %s1562_s25 }
0x2353   :  { %v982_v37 = vpop.permute.xlu0 %981 }
0x2354   :  { %v1831_v38 = vmul.f32 %v982_v37, %v966_v29 }
0x2356   :  { %v993_v39 = vpack.c.bf16 %v1831_v38, %v1831_v38 }
0x2358   :  { %995 = vrot.lane.b32.xlu1 %v993_v39, %s1563_s26 }
0x23ca   :  { %v996_v40 = vpop.permute.xlu1 %995 }
0x23cb   :  { %1438 = vmatmul.mubr.msk.bf16.vlgmr.msra.gmra.mrb[24].mxu1 %vm31_vm1, %v996_v40 }
0x23cc   :  { %1450 = vmatpush3.bf16.msra.mxu1 %v1730_v50  ;;  %1453 = vmatprep.mubr.msk.bf16.mxu1 %vm1560_vm0, %v1559_v0 }
0x23cd   :  { %1451 = vmatprep.subr.bf16.mxu1 %v1559_v0 }
0x23d0   :  { %1452 = vmatpush3.bf16.msra.mxu1 %v1736_v52 }
0x249e   :  { %v1034_v42 = vpop.f32.mrb[24].mxu1 }
0x249f   :  { %v1040_v43 = vadd.f32 %v1271_v41, %v1034_v42  ;;  %v1439_v44 = vpop.f32.mrb[25].mxu1 }
0x24a0   :  { %v1037_v45 = vpop.f32.mrb[26].mxu1 }
0x24a1   :  { %1541 = vtanh.f32 %v1040_v43  ;;  %v1440_v46 = vpop.f32.mrb[27].mxu1  ;;  %v1041_v50 = vmul.f32 0.5, %v1040_v43 }
0x24a3   :  { %1543 = vtanh.f32 %v1041_v50 }
0x24ab   :  { %v1542_v47 = vpop.eup %1541 }
0x24ac   :  { %1048 = vrot.lane.b32.xlu0 %v1542_v47, %s1562_s25 }
0x24ad   :  { %v1544_v48 = vpop.eup %1543 }
0x24ae   :  { %v1043_v49 = vadd.f32 1.0, %v1544_v48 }
0x24b0   :  { %v1044_v0 = vmul.f32 0.5, %v1043_v49 }
0x24b2   :  { %v1046_v53 = vmul.f32 %v1044_v0, %v978_v35 }
0x251e   :  { %v1049_v51 = vpop.permute.xlu0 %1048 }
0x251f   :  { %v1051_v52 = vmul.f32 %v1049_v51, %v1044_v0 }
0x2521   :  { %1053 = vrot.lane.b32.xlu1 %v1051_v52, %s1563_s26 }
0x2593   :  { %v1054_v54 = vpop.permute.xlu1 %1053 }
0x2594   :  { %v1056_v55 = vadd.f32 %v1054_v54, %v1046_v53 }
0x2596   :  { %1545 = vtanh.f32 %v1056_v55 }
0x25a0   :  { %v1546_v56 = vpop.eup %1545 }
0x25a1   :  { %1059 = vrot.lane.b32.xlu0 %v1546_v56, %s1562_s25 }
0x2613   :  { %v1060_v4 = vpop.permute.xlu0 %1059 }
0x2614   :  { %v1848_v58 = vmul.f32 %v1060_v4, %v1044_v0 }
0x2616   :  { %v1071_v59 = vpack.c.bf16 %v1848_v58, %v1848_v58 }
0x2618   :  { %1073 = vrot.lane.b32.xlu1 %v1071_v59, %s1563_s26 }
0x268a   :  { %v1074_v60 = vpop.permute.xlu1 %1073 }
0x268b   :  { %1446 = vmatmul.mubr.msk.bf16.vlgmr.msra.gmra.mrb[28].mxu0 %vm31_vm1, %v1074_v60 }
0x275e   :  { %v1112_v61 = vpop.f32.mrb[28].mxu0 }
0x275f   :  { %v1118_v62 = vadd.f32 %v1274_v6, %v1112_v61  ;;  %v1447_v63 = vpop.f32.mrb[29].mxu0 }
0x2760   :  { %v1115_v1 = vpop.f32.mrb[30].mxu0 }
0x2761   :  { %1547 = vtanh.f32 %v1118_v62  ;;  %v1448_v2 = vpop.f32.mrb[31].mxu0  ;;  %v1119_v5 = vmul.f32 0.5, %v1118_v62 }
0x2763   :  { %1549 = vtanh.f32 %v1119_v5 }
0x276b   :  { %v1548_v3 = vpop.eup %1547 }
0x276c   :  { %1126 = vrot.lane.b32.xlu0 %v1548_v3, %s1562_s25 }
0x276d   :  { %v1550_v7 = vpop.eup %1549 }
0x276e   :  { %v1121_v8 = vadd.f32 1.0, %v1550_v7 }
0x2770   :  { %v1122_v9 = vmul.f32 0.5, %v1121_v8 }
0x2772   :  { %v1124_v12 = vmul.f32 %v1122_v9, %v1056_v55 }
0x27de   :  { %v1127_v10 = vpop.permute.xlu0 %1126 }
0x27df   :  { %v1129_v11 = vmul.f32 %v1127_v10, %v1122_v9 }
0x27e1   :  { %1131 = vrot.lane.b32.xlu1 %v1129_v11, %s1563_s26 }
0x2853   :  { %v1132_v14 = vpop.permute.xlu1 %1131 }
0x2854   :  { %v1134_v15 = vadd.f32 %v1132_v14, %v1124_v12 }
0x2856   :  { %1551 = vtanh.f32 %v1134_v15 }
0x2860   :  { %v1552_v17 = vpop.eup %1551 }
0x2861   :  { %1137 = vrot.lane.b32.xlu0 %v1552_v17, %s1562_s25 }
0x28d3   :  { %v1138_v18 = vpop.permute.xlu0 %1137 }
0x28d4   :  { %v1140_v19 = vmul.f32 %v1138_v18, %v1122_v9 }
0x28d6   :  { %v1149_v20 = vpack.c.bf16 %v1140_v19, %v1140_v19 }
0x28d8   :  { %1151 = vrot.lane.b32.xlu1 %v1149_v20, %s1563_s26 }
0x294a   :  { %v1152_v21 = vpop.permute.xlu1 %1151 }
0x294b   :  { %1454 = vmatmul.mubr.msk.bf16.vlgmr.msra.gmra.mrb[28].mxu1 %vm31_vm1, %v1152_v21 }
0x2a1e   :  { %v1190_v23 = vpop.f32.mrb[28].mxu1 }
0x2a1f   :  { %v1196_v24 = vadd.f32 %v1277_v22, %v1190_v23  ;;  %v1455_v25 = vpop.f32.mrb[29].mxu1 }
0x2a20   :  { %v1193_v26 = vpop.f32.mrb[30].mxu1 }
0x2a21   :  { %1553 = vtanh.f32 %v1196_v24  ;;  %v1456_v27 = vpop.f32.mrb[31].mxu1  ;;  %v1197_v29 = vmul.f32 0.5, %v1196_v24 }
0x2a23   :  { %1555 = vtanh.f32 %v1197_v29 }
0x2a2b   :  { %v1554_v28 = vpop.eup %1553 }
0x2a2c   :  { %1204 = vrot.lane.b32.xlu0 %v1554_v28, %s1562_s25 }
0x2a2d   :  { %v1556_v30 = vpop.eup %1555 }
0x2a2e   :  { %v1199_v31 = vadd.f32 1.0, %v1556_v30 }
0x2a30   :  { %v1200_v32 = vmul.f32 0.5, %v1199_v31 }
0x2a32   :  { %v1202_v36 = vmul.f32 %v1200_v32, %v1134_v15 }
0x2a9e   :  { %v1205_v33 = vpop.permute.xlu0 %1204 }
0x2a9f   :  { %v1207_v35 = vmul.f32 %v1205_v33, %v1200_v32 }
0x2aa1   :  { %1209 = vrot.lane.b32.xlu1 %v1207_v35, %s1563_s26 }
0x2aa5   :  { %674 = vrot.lane.b32.xlu1 %v1760_v13, %s1563_s26 }
0x2aa9   :  { %830 = vrot.lane.b32.xlu1 %v1796_v57, %s1563_s26 }
0x2aad   :  { %986 = vrot.lane.b32.xlu1 %v1831_v38, %s1563_s26 }
0x2ab1   :  { %1142 = vrot.lane.b32.xlu1 %v1140_v19, %s1563_s26 }
0x2b13   :  { %v1210_v37 = vpop.permute.xlu1 %1209 }
0x2b14   :  { %v1212_v39 = vadd.f32 %v1210_v37, %v1202_v36 }
0x2b16   :  { %1557 = vtanh.f32 %v1212_v39  ;;  %1227 = vrot.lane.b32.xlu1 %v1212_v39, %s1564_s1 }
0x2b17   :  { %v675_v40 = vpop.permute.xlu1 %674 }
0x2b18   :  { %678 = vst.msk [vmem:[%s1925_s3] sm:$0x3] %vm677_vm2, %v675_v40 }
0x2b1b   :  { %v831_v13 = vpop.permute.xlu1 %830 }
0x2b1c   :  { %1264 = vst.msk [vmem:[%s1925_s3 + $0x4] sm:$0x3] %vm677_vm2, %v831_v13 }
0x2b1f   :  { %v987_v57 = vpop.permute.xlu1 %986 }
0x2b20   :  { %v1558_v38 = vpop.eup %1557  ;;  %1270 = vst.msk [vmem:[%s1925_s3 + $0x8] sm:$0x3] %vm677_vm2, %v987_v57 }
0x2b21   :  { %1215 = vrot.lane.b32.xlu0 %v1558_v38, %s1562_s25 }
0x2b23   :  { %v1143_v41 = vpop.permute.xlu1 %1142 }
0x2b24   :  { %1276 = vst.msk [vmem:[%s1925_s3 + $0xc] sm:$0x3] %vm677_vm2, %v1143_v41 }
0x2b25   :  { %752 = vrot.lane.b32.xlu0 %v1778_v34, %s1563_s26 }
0x2b29   :  { %908 = vrot.lane.b32.xlu0 %v1814_v16, %s1563_s26 }
0x2b2d   :  { %1064 = vrot.lane.b32.xlu0 %v1848_v58, %s1563_s26 }
0x2b88   :  { %v1228_v42 = vpop.permute.xlu1 %1227 }
0x2b89   :  { %1280 = vst.msk [vmem:[%s1926_s4 + $0x2] sm:$0x3] %vm677_vm2, %v1228_v42 }
0x2b93   :  { %v1216_v43 = vpop.permute.xlu0 %1215 }
0x2b94   :  { %v1218_v44 = vmul.f32 %v1216_v43, %v1200_v32 }
0x2b96   :  { %1220 = vrot.lane.b32.xlu0 %v1218_v44, %s1563_s26 }
0x2b97   :  { %v753_v45 = vpop.permute.xlu0 %752 }
0x2b98   :  { %1261 = vst.msk [vmem:[%s1925_s3 + $0x2] sm:$0x3] %vm677_vm2, %v753_v45 }
0x2b9b   :  { %v909_v34 = vpop.permute.xlu0 %908 }
0x2b9c   :  { %1267 = vst.msk [vmem:[%s1925_s3 + $0x6] sm:$0x3] %vm677_vm2, %v909_v34 }
0x2b9f   :  { %v1065_v16 = vpop.permute.xlu0 %1064 }
0x2ba0   :  { %1273 = vst.msk [vmem:[%s1925_s3 + $0xa] sm:$0x3] %vm677_vm2, %v1065_v16 }
0x2c08   :  { %v1221_v46 = vpop.permute.xlu0 %1220 }
0x2c09   :  { %1279 = vst.msk [vmem:[%s1925_s3 + $0xe] sm:$0x3] %vm677_vm2, %v1221_v46  ;;  %1225 = vst.msk [vmem:[%s1926_s4] sm:$0x3] %vm677_vm2, %v1221_v46 }

</bundles_post_ra>
